<compile_context>
chip_gen: v5e
topology: v5e:2x2
jax: 0.10.0
libtpu: 0.0.40
codegen_flags: <defaults>
</compile_context>

<pallas_src>
import functools
import math

import jax
import jax.numpy as jnp
from jax import lax
from jax.experimental import pallas as pl
from jax.experimental.pallas import tpu as pltpu


MASK_VALUE = -1e30  # large finite negative instead of -inf (avoids NaN rows)
_KV_BLOCK = 256     # key-block size for the flash-style path (S >= 2 * _KV_BLOCK)


def _layer_norm(x, gamma, beta, eps=1e-12):
    mean = jnp.mean(x, axis=-1, keepdims=True)
    var = jnp.mean((x - mean) ** 2, axis=-1, keepdims=True)
    return (x - mean) * jax.lax.rsqrt(var + eps) * gamma + beta


def _stack_kernel(
    x_ref, bias_ref,
    wqkv_ref, bqkv_ref, wo_ref,
    w1_ref, b1_ref, w2_ref, vecs_ref,
    out_ref,
    h_state, ctx_sl,
    *, n_heads):
    """One grid step == one TransformerBlock applied to Bt batch elements."""
    l = pl.program_id(1)

    bt, S, D = x_ref.shape
    M = bt * S
    dh = D // n_heads
    inv_sqrt_dh = 1.0 / math.sqrt(dh)

    # ---- load the carried hidden state (resident across the layer axis) ----
    @pl.when(l == 0)
    def _():
        h_state[...] = x_ref[...].reshape(M, D)

    x = h_state[...]                                   # (Bt*S, D) f32
    x_bf = x.astype(jnp.bfloat16)

    # ---- unpack small per-layer vectors (single packed (8, D) block) ----
    vecs = vecs_ref[0]                                 # (8, D) f32
    bo, ln1g, ln1b = vecs[0:1], vecs[1:2], vecs[2:3]
    b2, ln2g, ln2b = vecs[3:4], vecs[4:5], vecs[5:6]

    # ---- fused QKV projection (bf16 MXU, f32 accumulation, M = Bt*S rows) ----
    qkv = jnp.dot(x_bf, wqkv_ref[0], preferred_element_type=jnp.float32) + bqkv_ref[0]
    q_all = (qkv[:, :D] * inv_sqrt_dh).astype(jnp.bfloat16)   # scale after bias (torch order)
    k_all = qkv[:, D:2 * D].astype(jnp.bfloat16)
    v_all = qkv[:, 2 * D:].astype(jnp.bfloat16)

    use_flash = (S >= 2 * _KV_BLOCK) and (S % _KV_BLOCK == 0)

    # ---- per-(batch, head) attention; contexts written into a VMEM slab ----
    for b in range(bt):
        rows = slice(b * S, (b + 1) * S)
        bias_b = bias_ref[b]                           # (1, S): 0 / -1e30, broadcasts over rows
        for h in range(n_heads):
            cols = slice(h * dh, (h + 1) * dh)
            q_bh = q_all[rows, cols]                   # (S, dh)
            if not use_flash:
                # contraction over the last dims => K-transpose folded into MXU feed
                s = lax.dot_general(q_bh, k_all[rows, cols],
                                    (((1,), (1,)), ((), ())),
                                    preferred_element_type=jnp.float32)    # (S, S)
                s = s + bias_b
                m = jnp.max(s, axis=-1, keepdims=True)
                e = jnp.exp(s - m)
                w = e * pl.reciprocal(jnp.sum(e, axis=-1, keepdims=True), approx=True)
                # attention dropout -> identity at inference
                ctx_h = jnp.dot(w.astype(jnp.bfloat16), v_all[rows, cols],
                                preferred_element_type=jnp.float32)        # (S, dh)
            else:
                # flash-style key-block tiling with an online-softmax accumulator
                m_i = jnp.full((S, 1), -jnp.inf, jnp.float32)
                l_i = jnp.zeros((S, 1), jnp.float32)
                acc = jnp.zeros((S, dh), jnp.float32)
                for kb in range(S // _KV_BLOCK):
                    krows = slice(b * S + kb * _KV_BLOCK, b * S + (kb + 1) * _KV_BLOCK)
                    s = lax.dot_general(q_bh, k_all[krows, cols],
                                        (((1,), (1,)), ((), ())),
                                        preferred_element_type=jnp.float32)   # (S, KB)
                    s = s + bias_b[:, kb * _KV_BLOCK:(kb + 1) * _KV_BLOCK]
                    m_new = jnp.maximum(m_i, jnp.max(s, axis=-1, keepdims=True))
                    alpha = jnp.exp(m_i - m_new)
                    p = jnp.exp(s - m_new)
                    l_i = alpha * l_i + jnp.sum(p, axis=-1, keepdims=True)
                    acc = alpha * acc + jnp.dot(p.astype(jnp.bfloat16), v_all[krows, cols],
                                                preferred_element_type=jnp.float32)
                    m_i = m_new
                ctx_h = acc * pl.reciprocal(l_i, approx=True)
            ctx_sl[rows, cols] = ctx_h                 # slab store (no big concatenate)

    context = ctx_sl[...]                              # (Bt*S, D) f32
    # head_mask already folded into wo host-side

    # ---- output projection + residual + LayerNorm ----
    sa = jnp.dot(context.astype(jnp.bfloat16), wo_ref[0],
                 preferred_element_type=jnp.float32) + bo
    sa = _layer_norm(sa + x, ln1g, ln1b)

    # ---- FFN (fused bias gelu, tanh approximation) ----
    hdn = jnp.dot(sa.astype(jnp.bfloat16), w1_ref[0],
                  preferred_element_type=jnp.float32) + b1_ref[0]
    hdn = jax.nn.gelu(hdn, approximate=True)
    ffn = jnp.dot(hdn.astype(jnp.bfloat16), w2_ref[0],
                  preferred_element_type=jnp.float32) + b2
    # FusedBiasDropout -> identity at inference
    out = _layer_norm(ffn + sa, ln2g, ln2b)

    # carry hidden state; emit to HBM only after the last layer
    h_state[...] = out

    @pl.when(l == pl.num_programs(1) - 1)
    def _():
        out_ref[...] = out.reshape(bt, S, D).astype(out_ref.dtype)


# ------------------------------ VMEM budget / batch blocking ------------------------------
def _vmem_cap_bytes():
    """Physical per-core VMEM minus headroom (48 MiB on v7x, ~112 MiB on v5e/v6e)."""
    try:
        phys = pltpu.get_tpu_info().vmem_capacity_bytes
    except Exception:
        phys = 64 << 20          # conservative fallback: v7x per-TensorCore VMEM
    return max(int(phys) - (16 << 20), 32 << 20)


def _estimate_vmem_bytes(bt, S, D, HID):
    """Per-grid-step VMEM need: double-buffered blocks + scratch + activation working set."""
    bf16, f32 = 2, 4
    M = bt * S
    w_bytes = (3 * D * D + D * D + 2 * D * HID) * bf16            # wqkv, wo, w1, w2 (bf16)
    vec_bytes = (3 * D + HID + 8 * D) * f32                       # bqkv + b1 + packed vecs
    io_bytes = (M * D + bt * S + M * D) * f32                     # x block + mask + out block
    pipelined = 2 * (w_bytes + vec_bytes + io_bytes)              # BlockSpec double-buffering
    scratch = 2 * M * D * f32                                     # hidden state + context slab
    kb = min(S, _KV_BLOCK)
    act = (3 * M * D + M * HID + 4 * M * D) * f32 + 3 * S * kb * f32
    return int(1.2 * (pipelined + scratch + act))                 # 20% compiler headroom


def _choose_bt(B, S, D, HID, cap):
    """Largest batch block that fits VMEM while keeping >= 2 batch grid steps (v7x megacore)."""
    for bt in sorted((d for d in range(1, B + 1) if B % d == 0), reverse=True):
        if B >= 2 and B // bt < 2:
            continue
        if _estimate_vmem_bytes(bt, S, D, HID) <= cap:
            return bt
    return 1


# --------------------------------------- wrapper ---------------------------------------
def transformer_forward(x, attn_mask, head_mask, layer_params, *, block_batch=None):
    """Stack of TransformerBlocks.  x: (B, S, D), attn_mask: (B, S), head_mask: (L, H)."""
    B, S, D = x.shape
    L, H = head_mask.shape
    dh = D // H
    HID = layer_params[0]['w1'].shape[-1]

    cap = _vmem_cap_bytes()
    bt = block_batch if block_batch is not None else _choose_bt(B, S, D, HID, cap)
    assert B % bt == 0
    vmem_limit = int(min(cap, max(_estimate_vmem_bytes(bt, S, D, HID), 32 << 20)))

    # --- stack / fuse per-layer parameters (weights in bf16, rest in f32) ---
    wqkv = jnp.stack([jnp.concatenate([p['wq'], p['wk'], p['wv']], axis=-1)
                      for p in layer_params]).astype(jnp.bfloat16)            # (L, D, 3D)
    bqkv = jnp.stack([jnp.concatenate([p['bq'], p['bk'], p['bv']], axis=-1)
                      for p in layer_params]).astype(jnp.float32)             # (L, 1, 3D)
    # fold head_mask into the out-projection weights (exact for 0/1 masks; the
    # returned hidden state is identical to multiplying the attention weights)
    hm_rows = jnp.repeat(head_mask.astype(jnp.float32), dh, axis=-1)          # (L, D)
    wo = jnp.stack([hm_rows[i][:, None] * layer_params[i]['wo']
                    for i in range(L)]).astype(jnp.bfloat16)                  # (L, D, D)
    w1 = jnp.stack([p['w1'] for p in layer_params]).astype(jnp.bfloat16)      # (L, D, HID)
    b1 = jnp.stack([p['b1'] for p in layer_params]).astype(jnp.float32)       # (L, 1, HID)
    w2 = jnp.stack([p['w2'] for p in layer_params]).astype(jnp.bfloat16)      # (L, HID, D)

    zero_d = jnp.zeros((D,), jnp.float32)
    vecs = jnp.stack([jnp.stack([p['bo'][0], p['ln1_g'][0], p['ln1_b'][0],
                                 p['b2'][0], p['ln2_g'][0], p['ln2_b'][0],
                                 zero_d, zero_d])
                      for p in layer_params]).astype(jnp.float32)             # (L, 8, D)

    # additive key mask bias (finite, avoids NaN on fully-masked rows)
    mask_bias = jnp.where(attn_mask == 0, jnp.float32(MASK_VALUE),
                          jnp.float32(0.0)).reshape(B, 1, S)

    batch_idx = lambda b, l: (b, 0, 0)
    layer_idx = lambda b, l: (l, 0, 0)

    in_specs = [
        pl.BlockSpec((bt, S, D), batch_idx),         # x
        pl.BlockSpec((bt, 1, S), batch_idx),         # additive mask bias
        pl.BlockSpec((1, D, 3 * D), layer_idx),      # wqkv
        pl.BlockSpec((1, 1, 3 * D), layer_idx),      # bqkv
        pl.BlockSpec((1, D, D), layer_idx),          # wo (head_mask folded)
        pl.BlockSpec((1, D, HID), layer_idx),        # w1
        pl.BlockSpec((1, 1, HID), layer_idx),        # b1
        pl.BlockSpec((1, HID, D), layer_idx),        # w2
        pl.BlockSpec((1, 8, D), layer_idx),          # packed small per-layer vectors
    ]
    out_specs = pl.BlockSpec((bt, S, D), batch_idx)

    kernel = functools.partial(_stack_kernel, n_heads=H)
    return pl.pallas_call(
        kernel,
        out_shape=jax.ShapeDtypeStruct((B, S, D), jnp.float32),
        grid=(B // bt, L),
        in_specs=in_specs,
        out_specs=out_specs,
        scratch_shapes=[pltpu.VMEM((bt * S, D), jnp.float32),   # carried hidden state
                        pltpu.VMEM((bt * S, D), jnp.float32)],  # per-head context slab
        compiler_params=pltpu.CompilerParams(
            dimension_semantics=("parallel", "arbitrary"),
            vmem_limit_bytes=vmem_limit,
        ),
    )(x.astype(jnp.float32), mask_bias, wqkv, bqkv, wo, w1, b1, w2, vecs)


# ------------------------- pure-JAX reference (bf16-matmul emulating) -------------------------
def _forward_ref(x, attn_mask, head_mask, layer_params):
    B, S, D = x.shape
    L, H = head_mask.shape
    dh = D // H
    bf = lambda a: a.astype(jnp.bfloat16)
    bias = jnp.where(attn_mask == 0, jnp.float32(MASK_VALUE),
                     jnp.float32(0.0))[:, None, None, :]

    def lin(v, w, b):
        return jnp.einsum('bsd,df->bsf', bf(v), bf(w),
                          preferred_element_type=jnp.float32) + b

    h = x.astype(jnp.float32)
    for i, p in enumerate(layer_params):
        q = lin(h, p['wq'], p['bq']).reshape(B, S, H, dh).transpose(0, 2, 1, 3) / math.sqrt(dh)
        k = lin(h, p['wk'], p['bk']).reshape(B, S, H, dh).transpose(0, 2, 1, 3)
        v = lin(h, p['wv'], p['bv']).reshape(B, S, H, dh).transpose(0, 2, 1, 3)
        scores = jnp.einsum('bhqd,bhkd->bhqk', bf(q), bf(k),
                            preferred_element_type=jnp.float32) + bias
        w = jax.nn.softmax(scores, axis=-1) * head_mask[i][None, :, None, None]
        ctx = jnp.einsum('bhqk,bhkd->bhqd', bf(w), bf(v),
                         preferred_element_type=jnp.float32)
        ctx = ctx.transpose(0, 2, 1, 3).reshape(B, S, D)
        sa = _layer_norm(lin(ctx, p['wo'], p['bo']) + h, p['ln1_g'], p['ln1_b'])
        hh = jax.nn.gelu(lin(sa, p['w1'], p['b1']), approximate=True)
        ffn = lin(hh, p['w2'], p['b2'])
        h = _layer_norm(ffn + sa, p['ln2_g'], p['ln2_b'])
    return h


# ------------------------------------ params -------------------------------------
def init_layer_params(key, dim, hidden_dim):
    ks = jax.random.split(key, 6)
    std = 0.02
    return {
        'wq': jax.random.normal(ks[0], (dim, dim), jnp.float32) * std,
        'bq': jnp.zeros((1, dim), jnp.float32),
        'wk': jax.random.normal(ks[1], (dim, dim), jnp.float32) * std,
        'bk': jnp.zeros((1, dim), jnp.float32),
        'wv': jax.random.normal(ks[2], (dim, dim), jnp.float32) * std,
        'bv': jnp.zeros((1, dim), jnp.float32),
        'wo': jax.random.normal(ks[3], (dim, dim), jnp.float32) * std,
        'bo': jnp.zeros((1, dim), jnp.float32),
        'ln1_g': jnp.ones((1, dim), jnp.float32),
        'ln1_b': jnp.zeros((1, dim), jnp.float32),
        'w1': jax.random.normal(ks[4], (dim, hidden_dim), jnp.float32) * std,
        'b1': jnp.zeros((1, hidden_dim), jnp.float32),
        'w2': jax.random.normal(ks[5], (hidden_dim, dim), jnp.float32) * std,
        'b2': jnp.zeros((1, dim), jnp.float32),
        'ln2_g': jnp.ones((1, dim), jnp.float32),
        'ln2_b': jnp.zeros((1, dim), jnp.float32),
    }


if __name__ == "__main__":
    # small DistilBERT-like config: n_layers=2, dim=32, n_heads=4, hidden_dim=64
    # B=4 so the auto-chosen batch block is Bt=2 (exercises batch blocking and
    # keeps 2 parallel batch grid steps).
    B, S, D, H, HID, L = 4, 8, 32, 4, 64, 2

    key = jax.random.PRNGKey(0)
    kx, *kl = jax.random.split(key, L + 1)

    x = jax.random.normal(kx, (B, S, D), jnp.float32)
    attn_mask = jnp.ones((B, S), jnp.float32).at[:, -2:].set(0.0)   # pad last 2 tokens
    head_mask = jnp.ones((L, H), jnp.float32).at[0, 1].set(0.0)     # prune head 1 of layer 0

    layer_params = [init_layer_params(kl[i], D, HID) for i in range(L)]

    out = transformer_forward(x, attn_mask, head_mask, layer_params)
    out = jax.block_until_ready(out)

    ref = _forward_ref(x, attn_mask, head_mask, layer_params)
    assert out.shape == (B, S, D)
    assert bool(jnp.all(jnp.isfinite(out)))
    assert bool(jnp.allclose(out, ref, rtol=2e-2, atol=2e-2))

    print("KERNEL_OK")
</pallas_src>

<mosaic_0001>
module attributes {stable_mosaic.version = 11 : i64} {
  func.func @_stack_kernel(%arg0: i32, %arg1: i32, %arg2: memref<2x8x32xf32, #tpu.memory_space<vmem>>, %arg3: memref<2x1x8xf32, #tpu.memory_space<vmem>>, %arg4: memref<1x32x96xbf16, #tpu.memory_space<vmem>>, %arg5: memref<1x1x96xf32, #tpu.memory_space<vmem>>, %arg6: memref<1x32x32xbf16, #tpu.memory_space<vmem>>, %arg7: memref<1x32x64xbf16, #tpu.memory_space<vmem>>, %arg8: memref<1x1x64xf32, #tpu.memory_space<vmem>>, %arg9: memref<1x64x32xbf16, #tpu.memory_space<vmem>>, %arg10: memref<1x8x32xf32, #tpu.memory_space<vmem>>, %arg11: memref<2x8x32xf32, #tpu.memory_space<vmem>>, %arg12: memref<16x32xf32, #tpu.memory_space<vmem>>, %arg13: memref<16x32xf32, #tpu.memory_space<vmem>>) attributes {dimension_semantics = [#tpu.dimension_semantics<parallel>, #tpu.dimension_semantics<arbitrary>], iteration_bounds = array<i64: 2, 2>, scalar_prefetch = 0 : i64, scratch_operands = 2 : i64, tpu.core_type = #tpu.core_type<tc>, window_params = [{transform_indices = @transform_0, window_bounds = array<i64: 2, 8, 32>}, {transform_indices = @transform_1, window_bounds = array<i64: 2, 1, 8>}, {transform_indices = @transform_2, window_bounds = array<i64: 1, 32, 96>}, {transform_indices = @transform_3, window_bounds = array<i64: 1, 1, 96>}, {transform_indices = @transform_4, window_bounds = array<i64: 1, 32, 32>}, {transform_indices = @transform_5, window_bounds = array<i64: 1, 32, 64>}, {transform_indices = @transform_6, window_bounds = array<i64: 1, 1, 64>}, {transform_indices = @transform_7, window_bounds = array<i64: 1, 64, 32>}, {transform_indices = @transform_8, window_bounds = array<i64: 1, 8, 32>}, {transform_indices = @transform_9, window_bounds = array<i64: 2, 8, 32>}]} {
    %c0_i32 = arith.constant 0 : i32
    %0 = arith.cmpi eq, %arg1, %c0_i32 : i32
    %1 = arith.extui %0 : i1 to i32
    %c0_i32_0 = arith.constant 0 : i32
    %2 = arith.cmpi ne, %1, %c0_i32_0 : i32
    scf.if %2 {
      %c0_96 = arith.constant 0 : index
      %c0_97 = arith.constant 0 : index
      %c0_98 = arith.constant 0 : index
      %268 = vector.load %arg2[%c0_96, %c0_97, %c0_98] : memref<2x8x32xf32, #tpu.memory_space<vmem>>, vector<2x8x32xf32>
      %269 = vector.shape_cast %268 : vector<2x8x32xf32> to vector<16x32xf32>
      %c0_99 = arith.constant 0 : index
      %c0_100 = arith.constant 0 : index
      %270 = vector.load %arg12[%c0_99, %c0_100] : memref<16x32xf32, #tpu.memory_space<vmem>>, vector<16x32xf32>
      tpu.vector_store %arg12[%c0_99, %c0_100], %269 {strides = array<i32>} : memref<16x32xf32, #tpu.memory_space<vmem>>, vector<16x32xf32>,
    } else {
    }
    %c0 = arith.constant 0 : index
    %c0_1 = arith.constant 0 : index
    %3 = vector.load %arg12[%c0, %c0_1] : memref<16x32xf32, #tpu.memory_space<vmem>>, vector<16x32xf32>
    %4 = arith.truncf %3 : vector<16x32xf32> to vector<16x32xbf16>
    %c0_2 = arith.constant 0 : index
    %c0_3 = arith.constant 0 : index
    %c0_4 = arith.constant 0 : index
    %5 = vector.load %arg10[%c0_2, %c0_3, %c0_4] : memref<1x8x32xf32, #tpu.memory_space<vmem>>, vector<1x8x32xf32>
    %6 = vector.shape_cast %5 : vector<1x8x32xf32> to vector<8x32xf32>
    %7 = vector.extract_strided_slice %6 {offsets = [0, 0], sizes = [1, 32], strides = [1, 1]} : vector<8x32xf32> to vector<1x32xf32>
    %8 = vector.extract_strided_slice %6 {offsets = [1, 0], sizes = [1, 32], strides = [1, 1]} : vector<8x32xf32> to vector<1x32xf32>
    %9 = vector.extract_strided_slice %6 {offsets = [2, 0], sizes = [1, 32], strides = [1, 1]} : vector<8x32xf32> to vector<1x32xf32>
    %10 = vector.extract_strided_slice %6 {offsets = [3, 0], sizes = [1, 32], strides = [1, 1]} : vector<8x32xf32> to vector<1x32xf32>
    %11 = vector.extract_strided_slice %6 {offsets = [4, 0], sizes = [1, 32], strides = [1, 1]} : vector<8x32xf32> to vector<1x32xf32>
    %12 = vector.extract_strided_slice %6 {offsets = [5, 0], sizes = [1, 32], strides = [1, 1]} : vector<8x32xf32> to vector<1x32xf32>
    %c0_5 = arith.constant 0 : index
    %c0_6 = arith.constant 0 : index
    %c0_7 = arith.constant 0 : index
    %13 = vector.load %arg4[%c0_5, %c0_6, %c0_7] : memref<1x32x96xbf16, #tpu.memory_space<vmem>>, vector<1x32x96xbf16>
    %14 = vector.shape_cast %13 : vector<1x32x96xbf16> to vector<32x96xbf16>
    %cst = arith.constant dense<0.000000e+00> : vector<16x96xf32>
    %15 = tpu.matmul %4, %14, %cst {dimension_numbers = #tpu.dot_dimension_numbers<[1], [0], [0], [1], [0, 0, 1, 1], [], []>} : vector<16x32xbf16>, vector<32x96xbf16>, vector<16x96xf32> -> vector<16x96xf32>
    %c0_8 = arith.constant 0 : index
    %c0_9 = arith.constant 0 : index
    %c0_10 = arith.constant 0 : index
    %16 = vector.load %arg5[%c0_8, %c0_9, %c0_10] : memref<1x1x96xf32, #tpu.memory_space<vmem>>, vector<1x1x96xf32>
    %17 = vector.shape_cast %16 : vector<1x1x96xf32> to vector<1x96xf32>
    %18 = vector.broadcast %17 : vector<1x96xf32> to vector<16x96xf32>
    %19 = arith.addf %15, %18 : vector<16x96xf32>
    %20 = vector.extract_strided_slice %19 {offsets = [0, 0], sizes = [16, 32], strides = [1, 1]} : vector<16x96xf32> to vector<16x32xf32>
    %cst_11 = arith.constant 0.353553385 : f32
    %21 = vector.broadcast %cst_11 : f32 to vector<16x32xf32>
    %22 = arith.mulf %20, %21 : vector<16x32xf32>
    %23 = arith.truncf %22 : vector<16x32xf32> to vector<16x32xbf16>
    %24 = vector.extract_strided_slice %19 {offsets = [0, 32], sizes = [16, 32], strides = [1, 1]} : vector<16x96xf32> to vector<16x32xf32>
    %25 = arith.truncf %24 : vector<16x32xf32> to vector<16x32xbf16>
    %26 = vector.extract_strided_slice %19 {offsets = [0, 64], sizes = [16, 32], strides = [1, 1]} : vector<16x96xf32> to vector<16x32xf32>
    %27 = arith.truncf %26 : vector<16x32xf32> to vector<16x32xbf16>
    %c0_12 = arith.constant 0 : index
    %c0_13 = arith.constant 0 : index
    %c0_14 = arith.constant 0 : index
    %28 = vector.load %arg3[%c0_12, %c0_13, %c0_14] : memref<2x1x8xf32, #tpu.memory_space<vmem>>, vector<1x1x8xf32>
    %29 = vector.shape_cast %28 : vector<1x1x8xf32> to vector<1x8xf32>
    %30 = vector.extract_strided_slice %23 {offsets = [0, 0], sizes = [8, 8], strides = [1, 1]} : vector<16x32xbf16> to vector<8x8xbf16>
    %31 = vector.extract_strided_slice %25 {offsets = [0, 0], sizes = [8, 8], strides = [1, 1]} : vector<16x32xbf16> to vector<8x8xbf16>
    %cst_15 = arith.constant dense<0.000000e+00> : vector<8x8xf32>
    %32 = tpu.matmul %30, %31, %cst_15 {dimension_numbers = #tpu.dot_dimension_numbers<[1], [1], [0], [0], [0, 0, 1, 0], [], []>} : vector<8x8xbf16>, vector<8x8xbf16>, vector<8x8xf32> -> vector<8x8xf32>
    %33 = vector.broadcast %29 : vector<1x8xf32> to vector<8x8xf32>
    %34 = arith.addf %32, %33 : vector<8x8xf32>
    %cst_16 = arith.constant dense<0xFF800000> : vector<8xf32>
    %35 = vector.multi_reduction <maximumf>, %34, %cst_16 [1] : vector<8x8xf32> to vector<8xf32>
    %36 = vector.shape_cast %35 : vector<8xf32> to vector<8x1xf32>
    %37 = vector.broadcast %36 : vector<8x1xf32> to vector<8x8xf32>
    %38 = arith.subf %34, %37 : vector<8x8xf32>
    %39 = math.exp %38 : vector<8x8xf32>
    %cst_17 = arith.constant dense<0.000000e+00> : vector<8xf32>
    %40 = vector.multi_reduction <add>, %39, %cst_17 [1] : vector<8x8xf32> to vector<8xf32>
    %41 = vector.shape_cast %40 : vector<8xf32> to vector<8x1xf32>
    %42 = tpu.reciprocal %41 {approx = true} : vector<8x1xf32> -> vector<8x1xf32>
    %43 = vector.broadcast %42 : vector<8x1xf32> to vector<8x8xf32>
    %44 = arith.mulf %39, %43 : vector<8x8xf32>
    %45 = arith.truncf %44 : vector<8x8xf32> to vector<8x8xbf16>
    %46 = vector.extract_strided_slice %27 {offsets = [0, 0], sizes = [8, 8], strides = [1, 1]} : vector<16x32xbf16> to vector<8x8xbf16>
    %cst_18 = arith.constant dense<0.000000e+00> : vector<8x8xf32>
    %47 = tpu.matmul %45, %46, %cst_18 {dimension_numbers = #tpu.dot_dimension_numbers<[1], [0], [0], [1], [0, 0, 1, 1], [], []>} : vector<8x8xbf16>, vector<8x8xbf16>, vector<8x8xf32> -> vector<8x8xf32>
    %c0_19 = arith.constant 0 : index
    %c0_20 = arith.constant 0 : index
    %48 = vector.load %arg13[%c0_19, %c0_20] : memref<16x32xf32, #tpu.memory_space<vmem>>, vector<8x8xf32>
    tpu.vector_store %arg13[%c0_19, %c0_20], %47 {strides = array<i32>} : memref<16x32xf32, #tpu.memory_space<vmem>>, vector<8x8xf32>,
    %49 = vector.extract_strided_slice %23 {offsets = [0, 8], sizes = [8, 8], strides = [1, 1]} : vector<16x32xbf16> to vector<8x8xbf16>
    %50 = vector.extract_strided_slice %25 {offsets = [0, 8], sizes = [8, 8], strides = [1, 1]} : vector<16x32xbf16> to vector<8x8xbf16>
    %cst_21 = arith.constant dense<0.000000e+00> : vector<8x8xf32>
    %51 = tpu.matmul %49, %50, %cst_21 {dimension_numbers = #tpu.dot_dimension_numbers<[1], [1], [0], [0], [0, 0, 1, 0], [], []>} : vector<8x8xbf16>, vector<8x8xbf16>, vector<8x8xf32> -> vector<8x8xf32>
    %52 = vector.broadcast %29 : vector<1x8xf32> to vector<8x8xf32>
    %53 = arith.addf %51, %52 : vector<8x8xf32>
    %cst_22 = arith.constant dense<0xFF800000> : vector<8xf32>
    %54 = vector.multi_reduction <maximumf>, %53, %cst_22 [1] : vector<8x8xf32> to vector<8xf32>
    %55 = vector.shape_cast %54 : vector<8xf32> to vector<8x1xf32>
    %56 = vector.broadcast %55 : vector<8x1xf32> to vector<8x8xf32>
    %57 = arith.subf %53, %56 : vector<8x8xf32>
    %58 = math.exp %57 : vector<8x8xf32>
    %cst_23 = arith.constant dense<0.000000e+00> : vector<8xf32>
    %59 = vector.multi_reduction <add>, %58, %cst_23 [1] : vector<8x8xf32> to vector<8xf32>
    %60 = vector.shape_cast %59 : vector<8xf32> to vector<8x1xf32>
    %61 = tpu.reciprocal %60 {approx = true} : vector<8x1xf32> -> vector<8x1xf32>
    %62 = vector.broadcast %61 : vector<8x1xf32> to vector<8x8xf32>
    %63 = arith.mulf %58, %62 : vector<8x8xf32>
    %64 = arith.truncf %63 : vector<8x8xf32> to vector<8x8xbf16>
    %65 = vector.extract_strided_slice %27 {offsets = [0, 8], sizes = [8, 8], strides = [1, 1]} : vector<16x32xbf16> to vector<8x8xbf16>
    %cst_24 = arith.constant dense<0.000000e+00> : vector<8x8xf32>
    %66 = tpu.matmul %64, %65, %cst_24 {dimension_numbers = #tpu.dot_dimension_numbers<[1], [0], [0], [1], [0, 0, 1, 1], [], []>} : vector<8x8xbf16>, vector<8x8xbf16>, vector<8x8xf32> -> vector<8x8xf32>
    %c0_25 = arith.constant 0 : index
    %c8 = arith.constant 8 : index
    %67 = vector.load %arg13[%c0_25, %c8] : memref<16x32xf32, #tpu.memory_space<vmem>>, vector<8x8xf32>
    tpu.vector_store %arg13[%c0_25, %c8], %66 {strides = array<i32>} : memref<16x32xf32, #tpu.memory_space<vmem>>, vector<8x8xf32>,
    %68 = vector.extract_strided_slice %23 {offsets = [0, 16], sizes = [8, 8], strides = [1, 1]} : vector<16x32xbf16> to vector<8x8xbf16>
    %69 = vector.extract_strided_slice %25 {offsets = [0, 16], sizes = [8, 8], strides = [1, 1]} : vector<16x32xbf16> to vector<8x8xbf16>
    %cst_26 = arith.constant dense<0.000000e+00> : vector<8x8xf32>
    %70 = tpu.matmul %68, %69, %cst_26 {dimension_numbers = #tpu.dot_dimension_numbers<[1], [1], [0], [0], [0, 0, 1, 0], [], []>} : vector<8x8xbf16>, vector<8x8xbf16>, vector<8x8xf32> -> vector<8x8xf32>
    %71 = vector.broadcast %29 : vector<1x8xf32> to vector<8x8xf32>
    %72 = arith.addf %70, %71 : vector<8x8xf32>
    %cst_27 = arith.constant dense<0xFF800000> : vector<8xf32>
    %73 = vector.multi_reduction <maximumf>, %72, %cst_27 [1] : vector<8x8xf32> to vector<8xf32>
    %74 = vector.shape_cast %73 : vector<8xf32> to vector<8x1xf32>
    %75 = vector.broadcast %74 : vector<8x1xf32> to vector<8x8xf32>
    %76 = arith.subf %72, %75 : vector<8x8xf32>
    %77 = math.exp %76 : vector<8x8xf32>
    %cst_28 = arith.constant dense<0.000000e+00> : vector<8xf32>
    %78 = vector.multi_reduction <add>, %77, %cst_28 [1] : vector<8x8xf32> to vector<8xf32>
    %79 = vector.shape_cast %78 : vector<8xf32> to vector<8x1xf32>
    %80 = tpu.reciprocal %79 {approx = true} : vector<8x1xf32> -> vector<8x1xf32>
    %81 = vector.broadcast %80 : vector<8x1xf32> to vector<8x8xf32>
    %82 = arith.mulf %77, %81 : vector<8x8xf32>
    %83 = arith.truncf %82 : vector<8x8xf32> to vector<8x8xbf16>
    %84 = vector.extract_strided_slice %27 {offsets = [0, 16], sizes = [8, 8], strides = [1, 1]} : vector<16x32xbf16> to vector<8x8xbf16>
    %cst_29 = arith.constant dense<0.000000e+00> : vector<8x8xf32>
    %85 = tpu.matmul %83, %84, %cst_29 {dimension_numbers = #tpu.dot_dimension_numbers<[1], [0], [0], [1], [0, 0, 1, 1], [], []>} : vector<8x8xbf16>, vector<8x8xbf16>, vector<8x8xf32> -> vector<8x8xf32>
    %c0_30 = arith.constant 0 : index
    %c16 = arith.constant 16 : index
    %86 = vector.load %arg13[%c0_30, %c16] : memref<16x32xf32, #tpu.memory_space<vmem>>, vector<8x8xf32>
    tpu.vector_store %arg13[%c0_30, %c16], %85 {strides = array<i32>} : memref<16x32xf32, #tpu.memory_space<vmem>>, vector<8x8xf32>,
    %87 = vector.extract_strided_slice %23 {offsets = [0, 24], sizes = [8, 8], strides = [1, 1]} : vector<16x32xbf16> to vector<8x8xbf16>
    %88 = vector.extract_strided_slice %25 {offsets = [0, 24], sizes = [8, 8], strides = [1, 1]} : vector<16x32xbf16> to vector<8x8xbf16>
    %cst_31 = arith.constant dense<0.000000e+00> : vector<8x8xf32>
    %89 = tpu.matmul %87, %88, %cst_31 {dimension_numbers = #tpu.dot_dimension_numbers<[1], [1], [0], [0], [0, 0, 1, 0], [], []>} : vector<8x8xbf16>, vector<8x8xbf16>, vector<8x8xf32> -> vector<8x8xf32>
    %90 = vector.broadcast %29 : vector<1x8xf32> to vector<8x8xf32>
    %91 = arith.addf %89, %90 : vector<8x8xf32>
    %cst_32 = arith.constant dense<0xFF800000> : vector<8xf32>
    %92 = vector.multi_reduction <maximumf>, %91, %cst_32 [1] : vector<8x8xf32> to vector<8xf32>
    %93 = vector.shape_cast %92 : vector<8xf32> to vector<8x1xf32>
    %94 = vector.broadcast %93 : vector<8x1xf32> to vector<8x8xf32>
    %95 = arith.subf %91, %94 : vector<8x8xf32>
    %96 = math.exp %95 : vector<8x8xf32>
    %cst_33 = arith.constant dense<0.000000e+00> : vector<8xf32>
    %97 = vector.multi_reduction <add>, %96, %cst_33 [1] : vector<8x8xf32> to vector<8xf32>
    %98 = vector.shape_cast %97 : vector<8xf32> to vector<8x1xf32>
    %99 = tpu.reciprocal %98 {approx = true} : vector<8x1xf32> -> vector<8x1xf32>
    %100 = vector.broadcast %99 : vector<8x1xf32> to vector<8x8xf32>
    %101 = arith.mulf %96, %100 : vector<8x8xf32>
    %102 = arith.truncf %101 : vector<8x8xf32> to vector<8x8xbf16>
    %103 = vector.extract_strided_slice %27 {offsets = [0, 24], sizes = [8, 8], strides = [1, 1]} : vector<16x32xbf16> to vector<8x8xbf16>
    %cst_34 = arith.constant dense<0.000000e+00> : vector<8x8xf32>
    %104 = tpu.matmul %102, %103, %cst_34 {dimension_numbers = #tpu.dot_dimension_numbers<[1], [0], [0], [1], [0, 0, 1, 1], [], []>} : vector<8x8xbf16>, vector<8x8xbf16>, vector<8x8xf32> -> vector<8x8xf32>
    %c0_35 = arith.constant 0 : index
    %c24 = arith.constant 24 : index
    %105 = vector.load %arg13[%c0_35, %c24] : memref<16x32xf32, #tpu.memory_space<vmem>>, vector<8x8xf32>
    tpu.vector_store %arg13[%c0_35, %c24], %104 {strides = array<i32>} : memref<16x32xf32, #tpu.memory_space<vmem>>, vector<8x8xf32>,
    %c1 = arith.constant 1 : index
    %c0_36 = arith.constant 0 : index
    %c0_37 = arith.constant 0 : index
    %106 = vector.load %arg3[%c1, %c0_36, %c0_37] : memref<2x1x8xf32, #tpu.memory_space<vmem>>, vector<1x1x8xf32>
    %107 = vector.shape_cast %106 : vector<1x1x8xf32> to vector<1x8xf32>
    %108 = vector.extract_strided_slice %23 {offsets = [8, 0], sizes = [8, 8], strides = [1, 1]} : vector<16x32xbf16> to vector<8x8xbf16>
    %109 = vector.extract_strided_slice %25 {offsets = [8, 0], sizes = [8, 8], strides = [1, 1]} : vector<16x32xbf16> to vector<8x8xbf16>
    %cst_38 = arith.constant dense<0.000000e+00> : vector<8x8xf32>
    %110 = tpu.matmul %108, %109, %cst_38 {dimension_numbers = #tpu.dot_dimension_numbers<[1], [1], [0], [0], [0, 0, 1, 0], [], []>} : vector<8x8xbf16>, vector<8x8xbf16>, vector<8x8xf32> -> vector<8x8xf32>
    %111 = vector.broadcast %107 : vector<1x8xf32> to vector<8x8xf32>
    %112 = arith.addf %110, %111 : vector<8x8xf32>
    %cst_39 = arith.constant dense<0xFF800000> : vector<8xf32>
    %113 = vector.multi_reduction <maximumf>, %112, %cst_39 [1] : vector<8x8xf32> to vector<8xf32>
    %114 = vector.shape_cast %113 : vector<8xf32> to vector<8x1xf32>
    %115 = vector.broadcast %114 : vector<8x1xf32> to vector<8x8xf32>
    %116 = arith.subf %112, %115 : vector<8x8xf32>
    %117 = math.exp %116 : vector<8x8xf32>
    %cst_40 = arith.constant dense<0.000000e+00> : vector<8xf32>
    %118 = vector.multi_reduction <add>, %117, %cst_40 [1] : vector<8x8xf32> to vector<8xf32>
    %119 = vector.shape_cast %118 : vector<8xf32> to vector<8x1xf32>
    %120 = tpu.reciprocal %119 {approx = true} : vector<8x1xf32> -> vector<8x1xf32>
    %121 = vector.broadcast %120 : vector<8x1xf32> to vector<8x8xf32>
    %122 = arith.mulf %117, %121 : vector<8x8xf32>
    %123 = arith.truncf %122 : vector<8x8xf32> to vector<8x8xbf16>
    %124 = vector.extract_strided_slice %27 {offsets = [8, 0], sizes = [8, 8], strides = [1, 1]} : vector<16x32xbf16> to vector<8x8xbf16>
    %cst_41 = arith.constant dense<0.000000e+00> : vector<8x8xf32>
    %125 = tpu.matmul %123, %124, %cst_41 {dimension_numbers = #tpu.dot_dimension_numbers<[1], [0], [0], [1], [0, 0, 1, 1], [], []>} : vector<8x8xbf16>, vector<8x8xbf16>, vector<8x8xf32> -> vector<8x8xf32>
    %c8_42 = arith.constant 8 : index
    %c0_43 = arith.constant 0 : index
    %126 = vector.load %arg13[%c8_42, %c0_43] : memref<16x32xf32, #tpu.memory_space<vmem>>, vector<8x8xf32>
    tpu.vector_store %arg13[%c8_42, %c0_43], %125 {strides = array<i32>} : memref<16x32xf32, #tpu.memory_space<vmem>>, vector<8x8xf32>,
    %127 = vector.extract_strided_slice %23 {offsets = [8, 8], sizes = [8, 8], strides = [1, 1]} : vector<16x32xbf16> to vector<8x8xbf16>
    %128 = vector.extract_strided_slice %25 {offsets = [8, 8], sizes = [8, 8], strides = [1, 1]} : vector<16x32xbf16> to vector<8x8xbf16>
    %cst_44 = arith.constant dense<0.000000e+00> : vector<8x8xf32>
    %129 = tpu.matmul %127, %128, %cst_44 {dimension_numbers = #tpu.dot_dimension_numbers<[1], [1], [0], [0], [0, 0, 1, 0], [], []>} : vector<8x8xbf16>, vector<8x8xbf16>, vector<8x8xf32> -> vector<8x8xf32>
    %130 = vector.broadcast %107 : vector<1x8xf32> to vector<8x8xf32>
    %131 = arith.addf %129, %130 : vector<8x8xf32>
    %cst_45 = arith.constant dense<0xFF800000> : vector<8xf32>
    %132 = vector.multi_reduction <maximumf>, %131, %cst_45 [1] : vector<8x8xf32> to vector<8xf32>
    %133 = vector.shape_cast %132 : vector<8xf32> to vector<8x1xf32>
    %134 = vector.broadcast %133 : vector<8x1xf32> to vector<8x8xf32>
    %135 = arith.subf %131, %134 : vector<8x8xf32>
    %136 = math.exp %135 : vector<8x8xf32>
    %cst_46 = arith.constant dense<0.000000e+00> : vector<8xf32>
    %137 = vector.multi_reduction <add>, %136, %cst_46 [1] : vector<8x8xf32> to vector<8xf32>
    %138 = vector.shape_cast %137 : vector<8xf32> to vector<8x1xf32>
    %139 = tpu.reciprocal %138 {approx = true} : vector<8x1xf32> -> vector<8x1xf32>
    %140 = vector.broadcast %139 : vector<8x1xf32> to vector<8x8xf32>
    %141 = arith.mulf %136, %140 : vector<8x8xf32>
    %142 = arith.truncf %141 : vector<8x8xf32> to vector<8x8xbf16>
    %143 = vector.extract_strided_slice %27 {offsets = [8, 8], sizes = [8, 8], strides = [1, 1]} : vector<16x32xbf16> to vector<8x8xbf16>
    %cst_47 = arith.constant dense<0.000000e+00> : vector<8x8xf32>
    %144 = tpu.matmul %142, %143, %cst_47 {dimension_numbers = #tpu.dot_dimension_numbers<[1], [0], [0], [1], [0, 0, 1, 1], [], []>} : vector<8x8xbf16>, vector<8x8xbf16>, vector<8x8xf32> -> vector<8x8xf32>
    %c8_48 = arith.constant 8 : index
    %c8_49 = arith.constant 8 : index
    %145 = vector.load %arg13[%c8_48, %c8_49] : memref<16x32xf32, #tpu.memory_space<vmem>>, vector<8x8xf32>
    tpu.vector_store %arg13[%c8_48, %c8_49], %144 {strides = array<i32>} : memref<16x32xf32, #tpu.memory_space<vmem>>, vector<8x8xf32>,
    %146 = vector.extract_strided_slice %23 {offsets = [8, 16], sizes = [8, 8], strides = [1, 1]} : vector<16x32xbf16> to vector<8x8xbf16>
    %147 = vector.extract_strided_slice %25 {offsets = [8, 16], sizes = [8, 8], strides = [1, 1]} : vector<16x32xbf16> to vector<8x8xbf16>
    %cst_50 = arith.constant dense<0.000000e+00> : vector<8x8xf32>
    %148 = tpu.matmul %146, %147, %cst_50 {dimension_numbers = #tpu.dot_dimension_numbers<[1], [1], [0], [0], [0, 0, 1, 0], [], []>} : vector<8x8xbf16>, vector<8x8xbf16>, vector<8x8xf32> -> vector<8x8xf32>
    %149 = vector.broadcast %107 : vector<1x8xf32> to vector<8x8xf32>
    %150 = arith.addf %148, %149 : vector<8x8xf32>
    %cst_51 = arith.constant dense<0xFF800000> : vector<8xf32>
    %151 = vector.multi_reduction <maximumf>, %150, %cst_51 [1] : vector<8x8xf32> to vector<8xf32>
    %152 = vector.shape_cast %151 : vector<8xf32> to vector<8x1xf32>
    %153 = vector.broadcast %152 : vector<8x1xf32> to vector<8x8xf32>
    %154 = arith.subf %150, %153 : vector<8x8xf32>
    %155 = math.exp %154 : vector<8x8xf32>
    %cst_52 = arith.constant dense<0.000000e+00> : vector<8xf32>
    %156 = vector.multi_reduction <add>, %155, %cst_52 [1] : vector<8x8xf32> to vector<8xf32>
    %157 = vector.shape_cast %156 : vector<8xf32> to vector<8x1xf32>
    %158 = tpu.reciprocal %157 {approx = true} : vector<8x1xf32> -> vector<8x1xf32>
    %159 = vector.broadcast %158 : vector<8x1xf32> to vector<8x8xf32>
    %160 = arith.mulf %155, %159 : vector<8x8xf32>
    %161 = arith.truncf %160 : vector<8x8xf32> to vector<8x8xbf16>
    %162 = vector.extract_strided_slice %27 {offsets = [8, 16], sizes = [8, 8], strides = [1, 1]} : vector<16x32xbf16> to vector<8x8xbf16>
    %cst_53 = arith.constant dense<0.000000e+00> : vector<8x8xf32>
    %163 = tpu.matmul %161, %162, %cst_53 {dimension_numbers = #tpu.dot_dimension_numbers<[1], [0], [0], [1], [0, 0, 1, 1], [], []>} : vector<8x8xbf16>, vector<8x8xbf16>, vector<8x8xf32> -> vector<8x8xf32>
    %c8_54 = arith.constant 8 : index
    %c16_55 = arith.constant 16 : index
    %164 = vector.load %arg13[%c8_54, %c16_55] : memref<16x32xf32, #tpu.memory_space<vmem>>, vector<8x8xf32>
    tpu.vector_store %arg13[%c8_54, %c16_55], %163 {strides = array<i32>} : memref<16x32xf32, #tpu.memory_space<vmem>>, vector<8x8xf32>,
    %165 = vector.extract_strided_slice %23 {offsets = [8, 24], sizes = [8, 8], strides = [1, 1]} : vector<16x32xbf16> to vector<8x8xbf16>
    %166 = vector.extract_strided_slice %25 {offsets = [8, 24], sizes = [8, 8], strides = [1, 1]} : vector<16x32xbf16> to vector<8x8xbf16>
    %cst_56 = arith.constant dense<0.000000e+00> : vector<8x8xf32>
    %167 = tpu.matmul %165, %166, %cst_56 {dimension_numbers = #tpu.dot_dimension_numbers<[1], [1], [0], [0], [0, 0, 1, 0], [], []>} : vector<8x8xbf16>, vector<8x8xbf16>, vector<8x8xf32> -> vector<8x8xf32>
    %168 = vector.broadcast %107 : vector<1x8xf32> to vector<8x8xf32>
    %169 = arith.addf %167, %168 : vector<8x8xf32>
    %cst_57 = arith.constant dense<0xFF800000> : vector<8xf32>
    %170 = vector.multi_reduction <maximumf>, %169, %cst_57 [1] : vector<8x8xf32> to vector<8xf32>
    %171 = vector.shape_cast %170 : vector<8xf32> to vector<8x1xf32>
    %172 = vector.broadcast %171 : vector<8x1xf32> to vector<8x8xf32>
    %173 = arith.subf %169, %172 : vector<8x8xf32>
    %174 = math.exp %173 : vector<8x8xf32>
    %cst_58 = arith.constant dense<0.000000e+00> : vector<8xf32>
    %175 = vector.multi_reduction <add>, %174, %cst_58 [1] : vector<8x8xf32> to vector<8xf32>
    %176 = vector.shape_cast %175 : vector<8xf32> to vector<8x1xf32>
    %177 = tpu.reciprocal %176 {approx = true} : vector<8x1xf32> -> vector<8x1xf32>
    %178 = vector.broadcast %177 : vector<8x1xf32> to vector<8x8xf32>
    %179 = arith.mulf %174, %178 : vector<8x8xf32>
    %180 = arith.truncf %179 : vector<8x8xf32> to vector<8x8xbf16>
    %181 = vector.extract_strided_slice %27 {offsets = [8, 24], sizes = [8, 8], strides = [1, 1]} : vector<16x32xbf16> to vector<8x8xbf16>
    %cst_59 = arith.constant dense<0.000000e+00> : vector<8x8xf32>
    %182 = tpu.matmul %180, %181, %cst_59 {dimension_numbers = #tpu.dot_dimension_numbers<[1], [0], [0], [1], [0, 0, 1, 1], [], []>} : vector<8x8xbf16>, vector<8x8xbf16>, vector<8x8xf32> -> vector<8x8xf32>
    %c8_60 = arith.constant 8 : index
    %c24_61 = arith.constant 24 : index
    %183 = vector.load %arg13[%c8_60, %c24_61] : memref<16x32xf32, #tpu.memory_space<vmem>>, vector<8x8xf32>
    tpu.vector_store %arg13[%c8_60, %c24_61], %182 {strides = array<i32>} : memref<16x32xf32, #tpu.memory_space<vmem>>, vector<8x8xf32>,
    %c0_62 = arith.constant 0 : index
    %c0_63 = arith.constant 0 : index
    %184 = vector.load %arg13[%c0_62, %c0_63] : memref<16x32xf32, #tpu.memory_space<vmem>>, vector<16x32xf32>
    %185 = arith.truncf %184 : vector<16x32xf32> to vector<16x32xbf16>
    %c0_64 = arith.constant 0 : index
    %c0_65 = arith.constant 0 : index
    %c0_66 = arith.constant 0 : index
    %186 = vector.load %arg6[%c0_64, %c0_65, %c0_66] : memref<1x32x32xbf16, #tpu.memory_space<vmem>>, vector<1x32x32xbf16>
    %187 = vector.shape_cast %186 : vector<1x32x32xbf16> to vector<32x32xbf16>
    %cst_67 = arith.constant dense<0.000000e+00> : vector<16x32xf32>
    %188 = tpu.matmul %185, %187, %cst_67 {dimension_numbers = #tpu.dot_dimension_numbers<[1], [0], [0], [1], [0, 0, 1, 1], [], []>} : vector<16x32xbf16>, vector<32x32xbf16>, vector<16x32xf32> -> vector<16x32xf32>
    %189 = vector.broadcast %7 : vector<1x32xf32> to vector<16x32xf32>
    %190 = arith.addf %188, %189 : vector<16x32xf32>
    %191 = arith.addf %190, %3 : vector<16x32xf32>
    %cst_68 = arith.constant dense<0.000000e+00> : vector<16xf32>
    %192 = vector.multi_reduction <add>, %191, %cst_68 [1] : vector<16x32xf32> to vector<16xf32>
    %193 = vector.shape_cast %192 : vector<16xf32> to vector<16x1xf32>
    %cst_69 = arith.constant 3.200000e+01 : f32
    %194 = vector.broadcast %cst_69 : f32 to vector<16x1xf32>
    %195 = arith.divf %193, %194 : vector<16x1xf32>
    %196 = vector.broadcast %195 : vector<16x1xf32> to vector<16x32xf32>
    %197 = arith.subf %191, %196 : vector<16x32xf32>
    %198 = arith.mulf %197, %197 : vector<16x32xf32>
    %cst_70 = arith.constant dense<0.000000e+00> : vector<16xf32>
    %199 = vector.multi_reduction <add>, %198, %cst_70 [1] : vector<16x32xf32> to vector<16xf32>
    %200 = vector.shape_cast %199 : vector<16xf32> to vector<16x1xf32>
    %cst_71 = arith.constant 3.200000e+01 : f32
    %201 = vector.broadcast %cst_71 : f32 to vector<16x1xf32>
    %202 = arith.divf %200, %201 : vector<16x1xf32>
    %203 = vector.broadcast %195 : vector<16x1xf32> to vector<16x32xf32>
    %204 = arith.subf %191, %203 : vector<16x32xf32>
    %cst_72 = arith.constant 9.99999996E-13 : f32
    %205 = vector.broadcast %cst_72 : f32 to vector<16x1xf32>
    %206 = arith.addf %202, %205 : vector<16x1xf32>
    %207 = math.rsqrt %206 : vector<16x1xf32>
    %208 = vector.broadcast %207 : vector<16x1xf32> to vector<16x32xf32>
    %209 = arith.mulf %204, %208 : vector<16x32xf32>
    %210 = vector.broadcast %8 : vector<1x32xf32> to vector<16x32xf32>
    %211 = arith.mulf %209, %210 : vector<16x32xf32>
    %212 = vector.broadcast %9 : vector<1x32xf32> to vector<16x32xf32>
    %213 = arith.addf %211, %212 : vector<16x32xf32>
    %214 = arith.truncf %213 : vector<16x32xf32> to vector<16x32xbf16>
    %c0_73 = arith.constant 0 : index
    %c0_74 = arith.constant 0 : index
    %c0_75 = arith.constant 0 : index
    %215 = vector.load %arg7[%c0_73, %c0_74, %c0_75] : memref<1x32x64xbf16, #tpu.memory_space<vmem>>, vector<1x32x64xbf16>
    %216 = vector.shape_cast %215 : vector<1x32x64xbf16> to vector<32x64xbf16>
    %cst_76 = arith.constant dense<0.000000e+00> : vector<16x64xf32>
    %217 = tpu.matmul %214, %216, %cst_76 {dimension_numbers = #tpu.dot_dimension_numbers<[1], [0], [0], [1], [0, 0, 1, 1], [], []>} : vector<16x32xbf16>, vector<32x64xbf16>, vector<16x64xf32> -> vector<16x64xf32>
    %c0_77 = arith.constant 0 : index
    %c0_78 = arith.constant 0 : index
    %c0_79 = arith.constant 0 : index
    %218 = vector.load %arg8[%c0_77, %c0_78, %c0_79] : memref<1x1x64xf32, #tpu.memory_space<vmem>>, vector<1x1x64xf32>
    %219 = vector.shape_cast %218 : vector<1x1x64xf32> to vector<1x64xf32>
    %220 = vector.broadcast %219 : vector<1x64xf32> to vector<16x64xf32>
    %221 = arith.addf %217, %220 : vector<16x64xf32>
    %222 = arith.mulf %221, %221 : vector<16x64xf32>
    %223 = arith.mulf %221, %222 : vector<16x64xf32>
    %cst_80 = arith.constant 4.471500e-02 : f32
    %224 = vector.broadcast %cst_80 : f32 to vector<16x64xf32>
    %225 = arith.mulf %224, %223 : vector<16x64xf32>
    %226 = arith.addf %221, %225 : vector<16x64xf32>
    %cst_81 = arith.constant 0.797884583 : f32
    %227 = vector.broadcast %cst_81 : f32 to vector<16x64xf32>
    %228 = arith.mulf %227, %226 : vector<16x64xf32>
    %229 = math.tanh %228 : vector<16x64xf32>
    %cst_82 = arith.constant 1.000000e+00 : f32
    %230 = vector.broadcast %cst_82 : f32 to vector<16x64xf32>
    %231 = arith.addf %230, %229 : vector<16x64xf32>
    %cst_83 = arith.constant 5.000000e-01 : f32
    %232 = vector.broadcast %cst_83 : f32 to vector<16x64xf32>
    %233 = arith.mulf %232, %231 : vector<16x64xf32>
    %234 = arith.mulf %221, %233 : vector<16x64xf32>
    %235 = arith.truncf %234 : vector<16x64xf32> to vector<16x64xbf16>
    %c0_84 = arith.constant 0 : index
    %c0_85 = arith.constant 0 : index
    %c0_86 = arith.constant 0 : index
    %236 = vector.load %arg9[%c0_84, %c0_85, %c0_86] : memref<1x64x32xbf16, #tpu.memory_space<vmem>>, vector<1x64x32xbf16>
    %237 = vector.shape_cast %236 : vector<1x64x32xbf16> to vector<64x32xbf16>
    %cst_87 = arith.constant dense<0.000000e+00> : vector<16x32xf32>
    %238 = tpu.matmul %235, %237, %cst_87 {dimension_numbers = #tpu.dot_dimension_numbers<[1], [0], [0], [1], [0, 0, 1, 1], [], []>} : vector<16x64xbf16>, vector<64x32xbf16>, vector<16x32xf32> -> vector<16x32xf32>
    %239 = vector.broadcast %10 : vector<1x32xf32> to vector<16x32xf32>
    %240 = arith.addf %238, %239 : vector<16x32xf32>
    %241 = arith.addf %240, %213 : vector<16x32xf32>
    %cst_88 = arith.constant dense<0.000000e+00> : vector<16xf32>
    %242 = vector.multi_reduction <add>, %241, %cst_88 [1] : vector<16x32xf32> to vector<16xf32>
    %243 = vector.shape_cast %242 : vector<16xf32> to vector<16x1xf32>
    %cst_89 = arith.constant 3.200000e+01 : f32
    %244 = vector.broadcast %cst_89 : f32 to vector<16x1xf32>
    %245 = arith.divf %243, %244 : vector<16x1xf32>
    %246 = vector.broadcast %245 : vector<16x1xf32> to vector<16x32xf32>
    %247 = arith.subf %241, %246 : vector<16x32xf32>
    %248 = arith.mulf %247, %247 : vector<16x32xf32>
    %cst_90 = arith.constant dense<0.000000e+00> : vector<16xf32>
    %249 = vector.multi_reduction <add>, %248, %cst_90 [1] : vector<16x32xf32> to vector<16xf32>
    %250 = vector.shape_cast %249 : vector<16xf32> to vector<16x1xf32>
    %cst_91 = arith.constant 3.200000e+01 : f32
    %251 = vector.broadcast %cst_91 : f32 to vector<16x1xf32>
    %252 = arith.divf %250, %251 : vector<16x1xf32>
    %253 = vector.broadcast %245 : vector<16x1xf32> to vector<16x32xf32>
    %254 = arith.subf %241, %253 : vector<16x32xf32>
    %cst_92 = arith.constant 9.99999996E-13 : f32
    %255 = vector.broadcast %cst_92 : f32 to vector<16x1xf32>
    %256 = arith.addf %252, %255 : vector<16x1xf32>
    %257 = math.rsqrt %256 : vector<16x1xf32>
    %258 = vector.broadcast %257 : vector<16x1xf32> to vector<16x32xf32>
    %259 = arith.mulf %254, %258 : vector<16x32xf32>
    %260 = vector.broadcast %11 : vector<1x32xf32> to vector<16x32xf32>
    %261 = arith.mulf %259, %260 : vector<16x32xf32>
    %262 = vector.broadcast %12 : vector<1x32xf32> to vector<16x32xf32>
    %263 = arith.addf %261, %262 : vector<16x32xf32>
    %c0_93 = arith.constant 0 : index
    %c0_94 = arith.constant 0 : index
    %264 = vector.load %arg12[%c0_93, %c0_94] : memref<16x32xf32, #tpu.memory_space<vmem>>, vector<16x32xf32>
    tpu.vector_store %arg12[%c0_93, %c0_94], %263 {strides = array<i32>} : memref<16x32xf32, #tpu.memory_space<vmem>>, vector<16x32xf32>,
    %c1_i32 = arith.constant 1 : i32
    %265 = arith.cmpi eq, %arg1, %c1_i32 : i32
    %266 = arith.extui %265 : i1 to i32
    %c0_i32_95 = arith.constant 0 : i32
    %267 = arith.cmpi ne, %266, %c0_i32_95 : i32
    scf.if %267 {
      %268 = vector.shape_cast %263 : vector<16x32xf32> to vector<2x8x32xf32>
      %c0_96 = arith.constant 0 : index
      %c0_97 = arith.constant 0 : index
      %c0_98 = arith.constant 0 : index
      %269 = vector.load %arg11[%c0_96, %c0_97, %c0_98] : memref<2x8x32xf32, #tpu.memory_space<vmem>>, vector<2x8x32xf32>
      tpu.vector_store %arg11[%c0_96, %c0_97, %c0_98], %268 {strides = array<i32>} : memref<2x8x32xf32, #tpu.memory_space<vmem>>, vector<2x8x32xf32>,
    } else {
    }
    return
  }
  func.func @transform_0(%arg0: i32, %arg1: i32) -> (i32, i32, i32) {
    %c0_i32 = arith.constant 0 : i32
    %c0_i32_0 = arith.constant 0 : i32
    %c0_i32_1 = arith.constant 0 : i32
    return %arg0, %c0_i32, %c0_i32_0 : i32, i32, i32
  }
  func.func @transform_1(%arg0: i32, %arg1: i32) -> (i32, i32, i32) {
    %c0_i32 = arith.constant 0 : i32
    %c0_i32_0 = arith.constant 0 : i32
    %c0_i32_1 = arith.constant 0 : i32
    return %arg0, %c0_i32, %c0_i32_0 : i32, i32, i32
  }
  func.func @transform_2(%arg0: i32, %arg1: i32) -> (i32, i32, i32) {
    %c0_i32 = arith.constant 0 : i32
    %c0_i32_0 = arith.constant 0 : i32
    %c0_i32_1 = arith.constant 0 : i32
    return %arg1, %c0_i32, %c0_i32_0 : i32, i32, i32
  }
  func.func @transform_3(%arg0: i32, %arg1: i32) -> (i32, i32, i32) {
    %c0_i32 = arith.constant 0 : i32
    %c0_i32_0 = arith.constant 0 : i32
    %c0_i32_1 = arith.constant 0 : i32
    return %arg1, %c0_i32, %c0_i32_0 : i32, i32, i32
  }
  func.func @transform_4(%arg0: i32, %arg1: i32) -> (i32, i32, i32) {
    %c0_i32 = arith.constant 0 : i32
    %c0_i32_0 = arith.constant 0 : i32
    %c0_i32_1 = arith.constant 0 : i32
    return %arg1, %c0_i32, %c0_i32_0 : i32, i32, i32
  }
  func.func @transform_5(%arg0: i32, %arg1: i32) -> (i32, i32, i32) {
    %c0_i32 = arith.constant 0 : i32
    %c0_i32_0 = arith.constant 0 : i32
    %c0_i32_1 = arith.constant 0 : i32
    return %arg1, %c0_i32, %c0_i32_0 : i32, i32, i32
  }
  func.func @transform_6(%arg0: i32, %arg1: i32) -> (i32, i32, i32) {
    %c0_i32 = arith.constant 0 : i32
    %c0_i32_0 = arith.constant 0 : i32
    %c0_i32_1 = arith.constant 0 : i32
    return %arg1, %c0_i32, %c0_i32_0 : i32, i32, i32
  }
  func.func @transform_7(%arg0: i32, %arg1: i32) -> (i32, i32, i32) {
    %c0_i32 = arith.constant 0 : i32
    %c0_i32_0 = arith.constant 0 : i32
    %c0_i32_1 = arith.constant 0 : i32
    return %arg1, %c0_i32, %c0_i32_0 : i32, i32, i32
  }
  func.func @transform_8(%arg0: i32, %arg1: i32) -> (i32, i32, i32) {
    %c0_i32 = arith.constant 0 : i32
    %c0_i32_0 = arith.constant 0 : i32
    %c0_i32_1 = arith.constant 0 : i32
    return %arg1, %c0_i32, %c0_i32_0 : i32, i32, i32
  }
  func.func @transform_9(%arg0: i32, %arg1: i32) -> (i32, i32, i32) {
    %c0_i32 = arith.constant 0 : i32
    %c0_i32_0 = arith.constant 0 : i32
    %c0_i32_1 = arith.constant 0 : i32
    return %arg0, %c0_i32, %c0_i32_0 : i32, i32, i32
  }
}

</mosaic_0001>

<bundles_post_ra>
// kernel: tpu_custom_call.1
= control target key start
LH: loop header
LB: loop body
LE: loop exit
PB: predicated region body
PF: predicated region fallthrough
CT: control target
= control target key end

     0   :  { %s2715_s0 = inlined_call_operand.vmem [shape: f32[4,8,32], index: 0, kind: input, shape index: {}]   ;;  %s2716_s1 = inlined_call_operand.hbm [shape: f32[4,1,8], index: 1, kind: input, shape index: {}]   ;;  %s2717_s2 = inlined_call_operand.vmem [shape: bf16[2,32,96], index: 2, kind: input, shape index: {}]   ;;  %s2718_s3 = inlined_call_operand.hbm [shape: f32[2,1,96], index: 3, kind: input, shape index: {}]   ;;  %s2719_s4 = inlined_call_operand.vmem [shape: bf16[2,32,32], index: 4, kind: input, shape index: {}]   ;;  %s2720_s5 = inlined_call_operand.hbm [shape: bf16[2,32,64], index: 5, kind: input, shape index: {}]   ;;  %s2721_s6 = inlined_call_operand.vmem [shape: f32[2,1,64], index: 6, kind: input, shape index: {}]   ;;  %s2722_s7 = inlined_call_operand.vmem [shape: bf16[2,64,32], index: 7, kind: input, shape index: {}]   ;;  %s2723_s8 = inlined_call_operand.hbm [shape: f32[2,8,32], index: 8, kind: input, shape index: {}]   ;;  %s2724_s9 = inlined_call_operand.hbm [shape: f32[4,8,32], index: 9, kind: output, shape index: {}]  }
   0x1   :  { %2743 = sst [smem:[#allocation32_spill]] %s2715_s0 }
   0x2   :  { %2744 = sst [smem:[#allocation33_spill]] %s2716_s1 }
   0x3   :  { %2745 = sst [smem:[#allocation34_spill]] %s2717_s2 }
   0x4   :  { %2746 = sst [smem:[#allocation35_spill]] %s2718_s3 }
   0x5   :  { %2747 = sst [smem:[#allocation36_spill]] %s2719_s4 }
   0x6   :  { %2748 = sst [smem:[#allocation37_spill]] %s2720_s5 }
   0x7   :  { %2749 = sst [smem:[#allocation38_spill]] %s2721_s6 }
   0x8   :  { %2750 = sst [smem:[#allocation39_spill]] %s2722_s7 }
   0x9   :  { %2751 = sst [smem:[#allocation40_spill]] %s2723_s8 }
   0xa   :  { %2752 = sst [smem:[#allocation41_spill]] %s2724_s9 }
   0xb   :  { %14 = vsyncpa [#allocation5], 0 }
   0xc   :  { %16 = vsyncpa [#allocation5 + $0x1], 0 }
   0xd   :  { %17 = vsyncpa [#allocation8], 0 }
   0xe   :  { %19 = vsyncpa [#allocation8 + $0x1], 0 }
   0xf   :  { %20 = vsyncpa [#allocation11], 0 }
  0x10   :  { %22 = vsyncpa [#allocation11 + $0x1], 0 }
  0x11   :  { %23 = vsyncpa [#allocation6], 0 }
  0x12   :  { %25 = vsyncpa [#allocation6 + $0x1], 0  ;;  %s2234_s30 = smov 0   ;;  %s2236_s10 = smov 0  }
  0x13   :  { %s2238_s11 = smov 0   ;;  %s2240_s12 = smov 0  }
  0x14   :  { %s2242_s13 = smov 0   ;;  %s2244_s14 = smov 0  }
  0x15   :  { %s2246_s15 = smov 0   ;;  %s2248_s16 = smov 0  }
  0x16   :  { %s2250_s17 = smov 0   ;;  %s2252_s18 = smov 0  }
  0x17   :  { %s2254_s19 = smov 0  }
  0x18 LB: > { %2753 = sst [smem:[#allocation17_spill]] %s2126_s10  ;;  %s2290_s20 = sadd.s32 4294967295, %s2162_s19   ;;  %s2162_s19 = sphi %s2254_s19, %s31_s19   ;;  %s2158_s18 = sphi %s2252_s18, %s2809_s18   ;;  %s2154_s17 = sphi %s2250_s17, %s2808_s17   ;;  %s2150_s16 = sphi %s2248_s16, %s2807_s16   ;;  %s2146_s15 = sphi %s2246_s15, %s2806_s15   ;;  %s2142_s14 = sphi %s2244_s14, %s2805_s14   ;;  %s2138_s13 = sphi %s2242_s13, %s2804_s13   ;;  %s2134_s12 = sphi %s2240_s12, %s2803_s12   ;;  %s2130_s11 = sphi %s2238_s11, %s2802_s11   ;;  %s2126_s10 = sphi %s2236_s10, %s2801_s10   ;;  %s2122_s30 = sphi %s2234_s30, %s2800_s30  }
  0x19   : > { %2754 = sst [smem:[#allocation18_spill]] %s2130_s11  ;;  %s1619_s21 = sadd.s32 4294967294, %s2162_s19  }
  0x1a   : > { %2755 = sst [smem:[#allocation19_spill]] %s2134_s12  ;;  %s40_s22 = sadd.s32 1, %s2154_s17 }
  0x1b   : > { %2756 = sst [smem:[#allocation20_spill]] %s2138_s13  ;;  %p2295_p0 = scmp.ge.s32.totalorder %s40_s22, 2 }
  0x1c   : > { %2757 = sst [smem:[#allocation21_spill]] %s2142_s14  ;;  %p83_p1 = scmp.ne.s32.totalorder %s2142_s14, %s2138_s13 }
  0x1d   : > { %2758 = sst [smem:[#allocation22_spill]] %s2146_s15  ;;  %p84_p2 = scmp.eq.s32.totalorder %s2162_s19, 0 }
  0x1e   : > { %2759 = sst [smem:[#allocation23_spill]] %s2154_s17  ;;  %p2726_p3 = scmp.ne.s32.totalorder %s2138_s13, %s2134_s12 }
  0x1f   : > { %2760 = sst [smem:[#allocation24_spill]] %s2158_s18  ;;  %s2811_s22 = smov (%p2295_p0, %s40_s22), 0 }
  0x20   : > { %2761 = sst [smem:[#allocation25_spill]] %s2162_s19  ;;  %p2311_p4 = por %p84_p2, %p83_p1 }
  0x21   : > { %2763 = sst [smem:[#allocation26_spill]] %s2811_s22  ;;  %p90_p5 = scmp.eq.s32.totalorder %s2290_s20, 0 }
  0x22   : > { %s125_s26 = ssub.s32 %s2154_s17, %s2811_s22  ;;  %s128_s27 = sadd.s32 1, %s2130_s11 }
  0x23   : > { %p2322_p6 = por %p90_p5, %p2726_p3  ;;  %p126_p7 = scmp.eq.s32.totalorder %s125_s26, 0 }
  0x24   : > { %p135_p8 = scmp.ne.s32.totalorder %s2130_s11, %s2126_s10  ;;  %p141_p9 = scmp.ne.s32.totalorder %s2126_s10, %s2122_s30 }
  0x25   : > { %s2765_s28 = scalar_select %p2322_p6, 1, 0 }
  0x26   : > { %s2331_s29 = scalar_select %p126_p7, %s2130_s11, %s128_s27  }
  0x27   : > { %p2333_p10 = por %p135_p8, %p84_p2  ;;  %p2337_p11 = por %p141_p9, %p90_p5 }
  0x28   : > { %2766 = sst [smem:[#allocation27_spill]] %s2331_s29  ;;  %p295_p12 = scmp.eq.s32.totalorder %s2290_s20, 3 }
  0x29   : > { %p301_p13 = scmp.eq.s32.totalorder %s1619_s21, 3  ;;  %p1752_p3 = scmp.lt.s32.totalorder %s2162_s19, 4 }
  0x2a   : > { %p2346_p6 = por %p295_p12, %p83_p1  ;;  %p2771_p7 = scmp.ne.s32.totalorder %s2138_s13, %s2134_s12 }
  0x2b   : > { %p2359_p5 = pnand %p1752_p3, %p2311_p4  ;;  %s359_s29 = sand.u32 1, %s2162_s19  }
  0x2c   : > { %s2769_s26 = scalar_select %p2346_p6, 1, 0 }
  0x2d   : > { %p2353_p2 = por %p301_p13, %p2771_p7  ;;  %s2365_s21 = sand.u32 1, %s2130_s11  }
  0x2e   : > { %2770 = sst [smem:[#allocation28_spill]] %s2769_s26  ;;  %p2374_p1 = pnand %p1752_p3, %p2333_p10 }
  0x2f   : > { %s2772_s30 = scalar_select %p2353_p2, 1, 0 }
  0x30   : > { %s2775_s3 = sld [smem:[#allocation35_spill]]  ;;  %p1629_p4 = scmp.ge.s32.totalorder %s2162_s19, 1 }
  0x31   : > { %2773 = sst [smem:[#allocation29_spill]] %s2772_s30  ;;  %s362_s30 = scalar_lea.vmem [#allocation7], %s2365_s21 }
  0x32   : > { %s369_s25 = sshll.u32 %s362_s30, 4  ;;  %p437_p8 = scmp.lt.s32.totalorder %s2162_s19, 5  ;;  %s370_s25 = int_to_ptr.vmem [resolvable:$true] %s369_s25 }
  0x33   : > { %s2381_s7 = scalar_lea.sflag [#allocation8], %s359_s29  ;;  %s330_s23 = sand.u32 1, %s2142_s14  }
  0x34   : > { %p2386_p9 = pnand %p1629_p4, %p437_p8  ;;  %s1623_s30 = sshll.u32 %s2158_s18, 1 }
  0x35   : > { %s1622_s11 = sshll.u32 %s330_s23, 1  ;;  %s2778_s1 = sld [smem:[#allocation33_spill]] }
  0x36   : > { %s365_s12 = scalar_lea.hbm %s2775_s3, %s2154_s17  ;;  %s334_s24 = scalar_lea.vmem [#allocation4], %s1622_s11 }
  0x37   : > { %s367_s26 = sshll.u32 %s365_s12, 4  ;;  %s43_s12 = sadd.s32 1, %s2158_s18  ;;  %s368_s26 = int_to_ptr.hbm [resolvable:$true] %s367_s26 }
  0x38   : > { %1741 = dma.hbm_to_vmem [thread:$0]  (!%p2374_p1), %s368_s26, 16, %s370_s25, %s2381_s7  }
  0x39   : > { %s2813_s12 = smov (!%p2295_p0, %s43_s12), %s2158_s18  ;;  %s341_s4 = sshll.u32 %s334_s24, 4  ;;  %s342_s4 = int_to_ptr.vmem [resolvable:$true] %s341_s4 }
  0x3a   : > { %p45_p3 = scmp.ge.s32.totalorder %s2813_s12, 2  ;;  %s2780_s2 = sadd.s32 1, %s2142_s14 }
  0x3b   : > { %s338_s26 = scalar_lea.hbm %s2778_s1, %s1623_s30  ;;  %s331_s3 = scalar_lea.sflag [#allocation5], %s330_s23 }
  0x3c   : > { %s2815_s12 = smov (%p45_p3, %s2813_s12), 0  ;;  %s339_s25 = sshll.u32 %s338_s26, 4  ;;  %s340_s25 = int_to_ptr.hbm [resolvable:$true] %s339_s25 }
  0x3d   : > { %2779 = sst [smem:[#allocation30_spill]] %s2815_s12  ;;  %s73_s19 = ssub.s32 %s2158_s18, %s2815_s12 }
  0x3e   : > { %p74_p10 = scmp.eq.s32.totalorder %s73_s19, 0  ;;  %s2164_s29 = smov 16  }
  0x3f   : > { %s2165_s30 = smov 1   ;;  %s1710_s1 = sshll.u32 %s2154_s17, 4 }
  0x40   : > { %s2406_s0 = scalar_select %p74_p10, %s2142_s14, %s2780_s2  }
  0x41   : > { %1738 = dma.hbm_to_vmem [thread:$0]  (!%p2359_p5), %s340_s25, 32, %s342_s4, %s331_s3, %s2164_s29, %s2164_s29, %s2165_s30  }
  0x42   : > { %2781 = sst [smem:[#allocation31_spill]] %s2406_s0  ;;  %s2782_s26 = sshll.u32 %s2365_s21, 4 }
  0x43   : > { %s388_s12 = scalar_lea.vmem [#allocation9], %s2782_s26  ;;  %s2783_s5 = sld [smem:[#allocation37_spill]] }
  0x44   : > { %s396_s18 = sshll.u32 %s388_s12, 4  ;;  %s2166_s2 = smov 64   ;;  %s397_s18 = int_to_ptr.vmem [resolvable:$true] %s396_s18 }
  0x45   : > { %s2167_s0 = smov 4   ;;  %s1627_s23 = sshll.u32 %s2365_s21, 3 }
  0x46   : > { %s1628_s27 = sshll.u32 %s2154_s17, 3  ;;  %s2784_s8 = sld [smem:[#allocation40_spill]] }
  0x47   : > { %s424_s12 = scalar_lea.vmem [#allocation10], %s1627_s23  ;;  %p2785_p0 = scmp.ne.s32.totalorder (!%p2386_p9), %s2765_s28, 0 }
  0x48   : > { %s432_s29 = sshll.u32 %s424_s12, 4  ;;  %s433_s29 = int_to_ptr.vmem [resolvable:$true] %s432_s29 }
  0x49   : > { %s393_s24 = scalar_lea.hbm %s2783_s5, %s1710_s1  ;;  %s421_s1 = scalar_lea.sflag [#allocation11], %s2365_s21 }
  0x4a   : > { %s394_s15 = sshll.u32 %s393_s24, 4  ;;  %441 = sbr.rel (%p2386_p9) target bundleno = 2119 (0x847), region = 56  ;;  %s395_s15 = int_to_ptr.hbm [resolvable:$true] %s394_s15 }
  0x4b   : > { %1744 = dma.hbm_to_vmem [thread:$0]  (!%p2374_p1), %s395_s15, 256, %s397_s18, %s2381_s7, %s2166_s2, %s2166_s2, %s2167_s0  }
  0x4c   : > { %s428_s3 = scalar_lea.hbm %s2784_s8, %s1628_s27  ;;  %s2430_s0 = sand.u32 (!%p2386_p9), 1, %s2138_s13  }
  0x4d   : > { %s430_s30 = sshll.u32 %s428_s3, 4  ;;  %s1630_s15 = sshll.u32 (!%p2386_p9), %s2430_s0, 1  ;;  %s431_s30 = int_to_ptr.hbm [resolvable:$true] %s430_s30 }
  0x4e   : > { %1747 = dma.hbm_to_vmem [thread:$0]  (!%p2374_p1), %s431_s30, 128, %s433_s29, %s421_s1  }
  0x4f   : > { %s444_s18 = scalar_lea.sflag [#allocation5], %s2430_s0  ;;  %s2434_s7 = scalar_lea.vmem [#allocation4], %s1630_s15 }
  0x50   : > { %2105 = dma.done.wait (%p2785_p0), %s444_s18, 32  }
  0x51   : > { %2107 = vsyncadd (%p2785_p0), %s444_s18, 4294967264  ;;  %s453_s6 = sand.u32 1, %s2290_s20   ;;  %s2442_s21 = sand.u32 1, %s2126_s10  }
  0x52   : > { %s454_s9 = scalar_lea.sflag [#allocation8], %s453_s6 }
  0x53   : > { %2109 = dma.done.wait (%p2337_p11), %s454_s9, 272  }
  0x54   : > { %2111 = vsyncadd (%p2337_p11), %s454_s9, 4294967024  ;;  %s1631_s28 = sshll.u32 %s2442_s21, 4  ;;  %s1632_s19 = sshll.u32 %s2442_s21, 3 }
  0x55   : > { %s2451_s11 = scalar_lea.vmem [#allocation9], %s1631_s28  ;;  %s473_s24 = scalar_lea.sflag [#allocation11], %s2442_s21 }
  0x56   : > { %s2454_s20 = scalar_lea.vmem [#allocation10], %s1632_s19 }
  0x57   : > { %2113 = dma.done.wait (%p2337_p11), %s473_s24, 128  }
  0x58   : > { %2115 = vsyncadd (%p2337_p11), %s473_s24, 4294967168  ;;  %s2786_s2 = sld [smem:[#allocation22_spill]]  ;;  %s1633_s23 = sshll.u32 %s2430_s0, 4 }
  0x59   : > { %s1634_s27 = sshll.u32 %s2150_s16, 1  ;;  %s2787_s29 = sld [smem:[#allocation32_spill]] }
  0x5a   : > { %p550_p12 = scmp.lt.s32.totalorder %s1634_s27, 3  ;;  %s2788_s18 = sld [smem:[#allocation34_spill]] }
  0x5b   : > { %s2789_s19 = sld [smem:[#allocation36_spill]] }
  0x5c   : > { %s2817_s27 = smov (!%p550_p12, %s1634_s27), 3  ;;  %s2790_s8 = sld [smem:[#allocation38_spill]] }
  0x5d   : > { %s1635_s25 = sshll.u32 %s2817_s27, 3  ;;  %s2791_s10 = sld [smem:[#allocation39_spill]] }
  0x5e   : > { %p556_p13 = scmp.lt.s32.totalorder %s2786_s2, 1  ;;  %p1642_p11 = scmp.ne.s32.totalorder %s2786_s2, 0 }
  0x5f   : > { %s553_s22 = scalar_lea.vmem %s2787_s29, %s1635_s25  ;;  %s2488_s25 = scalar_lea.vmem [#allocation12], %s1633_s23 }
  0x60   : > { %s2464_s4 = scalar_select %p556_p13, %s2786_s2, 1 }
  0x61   : > { %579 = sbr.rel (%p1642_p11) target bundleno = 105 (0x69), region = 76 }
  0x62   : > { %s1711_s30 = sshll.u32 %s2464_s4, 4  ;;  %s568_s17 = scalar_lea.vmem %s2790_s8, %s2464_s4 }
  0x63   : > { %s560_s6 = scalar_lea.vmem %s2788_s18, %s1711_s30  ;;  %s2476_s24 = scalar_lea.vmem %s2789_s19, %s1711_s30 }
  0x64   : > { %s1713_s14 = sshll.u32 %s2464_s4, 5 }
  0x65   : > { %s2486_s3 = scalar_lea.vmem %s2791_s10, %s1713_s14 }
  0x66   : > { %v580_v0 = vld [vmem:[%s553_s22] sm:$0xff]  ;;  %vm582_vm0 = vcmask 261120   ;;  %v581_v1 = vld [vmem:[%s553_s22 + $0x8] sm:$0xff] }
  0x67   : > { %583 = vst.msk [vmem:[#allocation2] sm:$0xff] %vm582_vm0, %v580_v0 }
  0x68   : > { %584 = vst.msk [vmem:[#allocation2 + $0x8] sm:$0xff] %vm582_vm0, %v581_v1 }
  0x69 PF: > { %v1715_v2 = vld [vmem:[%s560_s6 + $0x8] sm:$0xff]  ;;  %v1714_v3 = vld [vmem:[%s560_s6] sm:$0xff]  ;;  %vm609_vm1 = vcmask 261120   ;;  %s2792_s5 = scalar_lea.vmem [#allocation7], %s2442_s21  ;;  %s2168_s8 = smov 96   ;;  %vm642_vm2 = vcmask 64512  }
  0x6a   : > { %619 = vmatpush.bf16.msra.mxu0 %v1715_v2  ;;  %v1862_v7 = vld [vmem:[%s2792_s5] ss:$0 sm:$0xff]  ;;  %s2169_s10 = smov 104   ;;  %s2170_s13 = smov 120   ;;  %v1864_v61 = vld [vmem:[%s2434_s7 + $0x1] ss:$0 sm:$0xff] }
  0x6b   : > { %s2171_s14 = smov 88   ;;  %s2172_s21 = smov 80   ;;  %v1863_v48 = vld [vmem:[%s2434_s7] ss:$0 sm:$0xff]  ;;  %vm679_vm3 = vcmask 1043456   ;;  %vm760_vm4 = vcmask 130112  }
  0x6c   : > { %s2173_s26 = smov 72   ;;  %s2174_s2 = smov 112   ;;  %vm822_vm5 = vcmask 195712   ;;  %vm884_vm6 = vcmask 261312   ;;  %vm1321_vm14 = vcmask 523264  }
  0x6d   : > { %s2175_s23 = smov 56   ;;  %s2176_s12 = smov 64  }
  0x6e   : > { %v2491_v4 = vld [vmem:[#allocation2] sm:$0xff]  ;;  %620 = vmatpush.bf16.msra.mxu0 %v1714_v3  ;;  %s2177_s7 = smov 48   ;;  %s2178_s29 = smov 40  }
  0x6f   : > { %v2493_v5 = vld [vmem:[#allocation2 + $0x8] sm:$0xff]  ;;  %s2179_s22 = smov 16   ;;  %s2180_s30 = smov 8  }
  0x70   : > { %v587_v6 = vpack.c.bf16 %v2493_v5, %v2491_v4  ;;  %s2181_s1 = smov 24  }
  0x72   : > { %1651 = vmatmul.msk.bf16.vlgmr.msra.gmra.mxu0 %vm609_vm1, %v587_v6 }
  0xef   : > { %v622_v8 = vpop.f32.mrf.mxu0 }
  0xf0   : > { %v623_v9 = vadd.f32 %v1862_v7, %v622_v8 }
  0xf2   : > { %v627_v10 = vmul.f32 0.35355338, %v623_v9  ;;  %v631_v11 = vpack.c.bf16 %v623_v9, %v623_v9 }
  0xf4   : > { %v629_v12 = vpack.c.bf16 %v627_v10, %v627_v10  ;;  %v638_v13 = vunpack.c.l.b16 %v631_v11 }
  0xf6   : > { %v2500_v14 = vpack.c.b16 %v638_v13, %v638_v13  ;;  %v698_v15 = vunpack.c.l.b16 %v629_v12 }
  0xf7   : > { %v624_v16 = vpop.f32.mrf.mxu0 }
  0xf8   : > { %v625_v17 = vadd.f32 %v1862_v7, %v624_v16  ;;  %640 = vrot.lane.b32.xlu0 %v2500_v14, %s2168_s8  ;;  %v699_v18 = vpack.c.b16 %v698_v15, %v698_v15 }
  0xfa   : > { %824 = vrot.lane.b32.xlu2 %v699_v18, %s2169_s10  ;;  %700 = vrot.lane.b32.xlu1 %v699_v18, %s2170_s13  ;;  %v628_v19 = vmul.f32 0.35355338, %v625_v17  ;;  %v632_v20 = vpack.c.bf16 %v625_v17, %v625_v17 }
  0xfc   : > { %v630_v21 = vpack.c.bf16 %v628_v19, %v628_v19  ;;  %v892_v22 = vunpack.c.l.b16 %v632_v20 }
  0xfe   : > { %v950_v23 = vunpack.c.l.b16 %v630_v21  ;;  %v2506_v24 = vpack.c.b16 %v892_v22, %v892_v22 }
 0x100   : > { %702 = vrot.lane.b32.xlu0 %v2500_v14, %s2171_s14  ;;  %v951_v25 = vpack.c.b16 %v950_v23, %v950_v23 }
 0x102   : > { %764 = vrot.lane.b32.xlu2 %v2500_v14, %s2172_s21  ;;  %826 = vrot.lane.b32.xlu1 %v2500_v14, %s2173_s26 }
 0x108   : > { %954 = vrot.lane.b32.xlu0 %v2506_v24, %s2171_s14 }
 0x10a   : > { %952 = vrot.lane.b32.xlu2 %v951_v25, %s2170_s13  ;;  %762 = vrot.lane.b32.xlu1 %v699_v18, %s2174_s2 }
 0x110   : > { %894 = vrot.lane.b32.xlu0 %v2506_v24, %s2168_s8 }
 0x112   : > { %1074 = vrot.lane.b32.xlu2 %v951_v25, %s2169_s10  ;;  %1076 = vrot.lane.b32.xlu1 %v2506_v24, %s2173_s26 }
 0x118   : > { %1015 = vrot.lane.b32.xlu0 %v2506_v24, %s2172_s21 }
 0x11a   : > { %1013 = vrot.lane.b32.xlu1 %v951_v25, %s2174_s2 }
 0x122   : > { %735 = vrot.lane.b32.xlu1 %v2500_v14, %s2175_s23 }
 0x154   : > { %v825_v26 = vpop.permute.xlu2 %824 }
 0x15c   : > { %v765_v27 = vpop.permute.xlu2 %764 }
 0x15d   : > { %v770_v28 = vsel %vm642_vm2, %v765_v27, 0 }
 0x15e   : > { %779 = vmatpush.bf16.xpose.msrb.mxu0 %v770_v28 }
 0x164   : > { %v953_v45 = vpop.permute.xlu2 %952 }
 0x16a   : > { %v641_v29 = vpop.permute.xlu0 %640 }
 0x16b   : > { %v647_v30 = vsel %vm642_vm2, %v641_v29, 0 }
 0x16c   : > { %656 = vmatpush.bf16.xpose.msra.mxu1 %v647_v30  ;;  %v701_v31 = vpop.permute.xlu1 %700  ;;  %v1075_v47 = vpop.permute.xlu2 %1074 }
 0x172   : > { %v703_v32 = vpop.permute.xlu0 %702 }
 0x173   : > { %1652 = vmatmul.msk.bf16.vlgmr.msra.gmra.mxu1 %vm642_vm2, %v629_v12  ;;  %v708_v33 = vsel %vm642_vm2, %v703_v32, 0 }
 0x174   : > { %717 = vmatpush.bf16.xpose.msra.mxu3 %v708_v33  ;;  %v827_v34 = vpop.permute.xlu1 %826 }
 0x175   : > { %v832_v35 = vsel %vm642_vm2, %v827_v34, 0 }
 0x17a   : > { %v955_v36 = vpop.permute.xlu0 %954 }
 0x17b   : > { %v960_v37 = vsel %vm642_vm2, %v955_v36, 0  ;;  %1654 = vmatmul.msk.bf16.vlgmr.msra.gmra.mxu3 %vm642_vm2, %v701_v31 }
 0x17c   : > { %841 = vmatpush.bf16.xpose.msrb.mxu3 %v832_v35  ;;  %v763_v38 = vpop.permute.xlu1 %762 }
 0x17d   : > { %1656 = vmatmul.msk.bf16.vlgmr.msrb.gmra.mxu0 %vm642_vm2, %v763_v38 }
 0x182   : > { %v895_v39 = vpop.permute.xlu0 %894 }
 0x183   : > { %v900_v40 = vsel %vm642_vm2, %v895_v39, 0 }
 0x184   : > { %969 = vmatpush.bf16.xpose.msra.mxu3 %v960_v37  ;;  %909 = vmatpush.bf16.xpose.msra.mxu0 %v900_v40  ;;  %v1077_v41 = vpop.permute.xlu1 %1076 }
 0x185   : > { %v1082_v43 = vsel %vm642_vm2, %v1077_v41, 0 }
 0x18a   : > { %v1016_v42 = vpop.permute.xlu0 %1015 }
 0x18b   : > { %v1021_v44 = vsel %vm642_vm2, %v1016_v42, 0  ;;  %1658 = vmatmul.msk.bf16.vlgmr.msrb.gmra.mxu3 %vm642_vm2, %v825_v26 }
 0x18c   : > { %1091 = vmatpush.bf16.xpose.msrb.mxu3 %v1082_v43  ;;  %1030 = vmatpush.bf16.xpose.msrb.mxu0 %v1021_v44  ;;  %v1014_v46 = vpop.permute.xlu1 %1013 }
 0x18d   : > { %1661 = vmatmul.msk.bf16.vlgmr.msra.gmra.mxu0 %vm642_vm2, %v630_v21 }
 0x194   : > { %v736_v32 = vpop.permute.xlu1 %735 }
 0x195   : > { %v741_v36 = vsel %vm679_vm3, %v736_v32, 0 }
 0x19b   : > { %1663 = vmatmul.msk.bf16.vlgmr.msra.gmra.mxu3 %vm642_vm2, %v953_v45 }
 0x19d   : > { %1665 = vmatmul.msk.bf16.vlgmr.msrb.gmra.mxu0 %vm642_vm2, %v1014_v46 }
 0x1ab   : > { %1667 = vmatmul.msk.bf16.vlgmr.msrb.gmra.mxu3 %vm642_vm2, %v1075_v47 }
 0x1f0   : > { %v658_v49 = vpop.f32.mrf.mxu1 }
 0x1f1   : > { %v659_v50 = vadd.f32 %v1863_v48, %v658_v49 }
 0x1f3   : > { %v662_v51 = vsel %vm642_vm2, %v659_v50, -inf }
 0x1f4   : > { %663 = vmax.xlane.f32.xlu2 %v662_v51 }
 0x1f8   : > { %v660_v52 = vpop.f32.mrf.mxu1 }
 0x1fa   : > { %v781_v53 = vpop.f32.mrf.mxu0 }
 0x1fb   : > { %v782_v54 = vadd.f32 %v1863_v48, %v781_v53 }
 0x1fd   : > { %v785_v55 = vsel %vm642_vm2, %v782_v54, -inf }
 0x1fe   : > { %v719_v56 = vpop.f32.mrf.mxu3  ;;  %786 = vmax.xlane.f32.xlu2 %v785_v55 }
 0x1ff   : > { %v720_v57 = vadd.f32 %v1863_v48, %v719_v56 }
 0x201   : > { %v723_v58 = vsel %vm642_vm2, %v720_v57, -inf }
 0x202   : > { %724 = vmax.xlane.f32.xlu0 %v723_v58  ;;  %v783_v59 = vpop.f32.mrf.mxu0 }
 0x206   : > { %v721_v60 = vpop.f32.mrf.mxu3 }
 0x20a   : > { %v911_v62 = vpop.f32.mrf.mxu0 }
 0x20b   : > { %v2535_v63 = vadd.f32 %v1864_v61, %v911_v62 }
 0x20d   : > { %v915_v0 = vsel %vm642_vm2, %v2535_v63, -inf }
 0x20e   : > { %v843_v1 = vpop.f32.mrf.mxu3  ;;  %916 = vmax.xlane.f32.xlu1 %v915_v0 }
 0x20f   : > { %v2539_v2 = vadd.f32 %v1863_v48, %v843_v1 }
 0x211   : > { %v847_v6 = vsel %vm642_vm2, %v2539_v2, -inf }
 0x212   : > { %v913_v3 = vpop.f32.mrf.mxu0 }
 0x216   : > { %v845_v7 = vpop.f32.mrf.mxu3  ;;  %848 = vmax.xlane.f32.xlu1 %v847_v6  ;;  %674 = vrot.lane.b32.xlu2 %v2500_v14, %s2176_s12 }
 0x21a   : > { %v1032_v8 = vpop.f32.mrf.mxu0 }
 0x21b   : > { %v2545_v9 = vadd.f32 %v1864_v61, %v1032_v8 }
 0x21d   : > { %v1036_v10 = vsel %vm642_vm2, %v2545_v9, -inf }
 0x21e   : > { %v971_v11 = vpop.f32.mrf.mxu3  ;;  %1037 = vmax.xlane.f32.xlu0 %v1036_v10 }
 0x21f   : > { %v972_v19 = vadd.f32 %v1864_v61, %v971_v11 }
 0x221   : > { %v975_v20 = vsel %vm642_vm2, %v972_v19, -inf }
 0x222   : > { %v1034_v12 = vpop.f32.mrf.mxu0 }
 0x226   : > { %v973_v13 = vpop.f32.mrf.mxu3 }
 0x22e   : > { %v1093_v15 = vpop.f32.mrf.mxu3 }
 0x22f   : > { %v1094_v16 = vadd.f32 %v1864_v61, %v1093_v15  ;;  %797 = vrot.lane.b32.xlu1 %v2500_v14, %s2177_s7 }
 0x231   : > { %v1097_v17 = vsel %vm642_vm2, %v1094_v16, -inf }
 0x232   : > { %1098 = vmax.xlane.f32.xlu0 %v1097_v17 }
 0x236   : > { %v1095_v18 = vpop.f32.mrf.mxu3 }
 0x23f   : > { %976 = vmax.xlane.f32.xlu2 %v975_v20 }
 0x267   : > { %v664_v21 = vpop.xlane.xlu2 %663 }
 0x268   : > { %v665_v22 = vsub.f32 %v659_v50, %v664_v21 }
 0x26a   : > { %v666_v23 = vmul.f32 1.442695, %v665_v22 }
 0x26c   : > { %1866 = vpow2.f32 %v666_v23 }
 0x271   : > { %v787_v25 = vpop.xlane.xlu2 %786 }
 0x272   : > { %v2553_v26 = vpop.eup %1866  ;;  %v788_v27 = vsub.f32 %v782_v54, %v787_v25 }
 0x273   : > { %v668_v28 = vsel %vm642_vm2, %v2553_v26, 0.0 }
 0x274   : > { %v789_v29 = vmul.f32 1.442695, %v788_v27  ;;  %669 = vadd.xlane.f32.xlu0 %v668_v28 }
 0x275   : > { %v725_v30 = vpop.xlane.xlu0 %724 }
 0x276   : > { %1868 = vpow2.f32 %v789_v29  ;;  %v726_v31 = vsub.f32 %v720_v57, %v725_v30 }
 0x278   : > { %v727_v33 = vmul.f32 1.442695, %v726_v31 }
 0x279   : > { %v675_v34 = vpop.permute.xlu2 %674 }
 0x27a   : > { %1870 = vpow2.f32 %v727_v33  ;;  %v681_v35 = vsel %vm679_vm3, %v675_v34, 0 }
 0x27b   : > { %690 = vmatpush.bf16.msra.mxu2 %v681_v35 }
 0x27c   : > { %v1869_v37 = vpop.eup %1868 }
 0x27d   : > { %v791_v38 = vsel %vm642_vm2, %v1869_v37, 0.0 }
 0x27e   : > { %792 = vadd.xlane.f32.xlu2 %v791_v38 }
 0x27f   : > { %750 = vmatpush.bf16.msrb.mxu2 %v741_v36 }
 0x280   : > { %v2560_v39 = vpop.eup %1870 }
 0x281   : > { %v729_v40 = vsel %vm642_vm2, %v2560_v39, 0.0  ;;  %v917_v41 = vpop.xlane.xlu1 %916 }
 0x282   : > { %730 = vadd.xlane.f32.xlu1 %v729_v40  ;;  %v918_v43 = vsub.f32 %v2535_v63, %v917_v41 }
 0x284   : > { %v919_v46 = vmul.f32 1.442695, %v918_v43 }
 0x286   : > { %1872 = vpow2.f32 %v919_v46 }
 0x288   : > { %859 = vrot.lane.b32.xlu0 %v2500_v14, %s2178_s29 }
 0x289   : > { %v849_v42 = vpop.xlane.xlu1 %848 }
 0x28a   : > { %v850_v48 = vsub.f32 %v2539_v2, %v849_v42 }
 0x28c   : > { %v851_v14 = vmul.f32 1.442695, %v850_v48  ;;  %v1873_v51 = vpop.eup %1872 }
 0x28d   : > { %v921_v54 = vsel %vm642_vm2, %v1873_v51, 0.0 }
 0x28e   : > { %1874 = vpow2.f32 %v851_v14 }
 0x291   : > { %v1038_v47 = vpop.xlane.xlu0 %1037 }
 0x292   : > { %v1039_v49 = vsub.f32 %v2545_v9, %v1038_v47 }
 0x294   : > { %v1040_v53 = vmul.f32 1.442695, %v1039_v49  ;;  %v1875_v58 = vpop.eup %1874 }
 0x295   : > { %v853_v60 = vsel %vm642_vm2, %v1875_v58, 0.0 }
 0x296   : > { %987 = vrot.lane.b32.xlu2 %v2506_v24, %s2175_s23  ;;  %1876 = vpow2.f32 %v1040_v53 }
 0x29b   : > { %927 = vrot.lane.b32.xlu1 %v2506_v24, %s2176_s12 }
 0x29c   : > { %v2576_v61 = vpop.eup %1876 }
 0x29d   : > { %v1042_v63 = vsel %vm642_vm2, %v2576_v61, 0.0 }
 0x2a1   : > { %v798_v44 = vpop.permute.xlu1 %797 }
 0x2a2   : > { %v803_v45 = vsel %vm679_vm3, %v798_v44, 0 }
 0x2a3   : > { %812 = vmatpush.bf16.msrb.mxu1 %v803_v45 }
 0x2a5   : > { %v1099_v50 = vpop.xlane.xlu0 %1098 }
 0x2a6   : > { %v1100_v52 = vsub.f32 %v1094_v16, %v1099_v50 }
 0x2a8   : > { %v1101_v57 = vmul.f32 1.442695, %v1100_v52 }
 0x2aa   : > { %1878 = vpow2.f32 %v1101_v57 }
 0x2b0   : > { %v2578_v62 = vpop.eup %1878 }
 0x2b1   : > { %v1103_v1 = vsel %vm642_vm2, %v2578_v62, 0.0 }
 0x2b2   : > { %922 = vadd.xlane.f32.xlu0 %v921_v54  ;;  %v977_v55 = vpop.xlane.xlu2 %976 }
 0x2b3   : > { %v978_v56 = vsub.f32 %v972_v19, %v977_v55 }
 0x2b5   : > { %v979_v59 = vmul.f32 1.442695, %v978_v56 }
 0x2b7   : > { %1880 = vpow2.f32 %v979_v59 }
 0x2ba   : > { %854 = vadd.xlane.f32.xlu0 %v853_v60 }
 0x2bd   : > { %v1881_v0 = vpop.eup %1880 }
 0x2be   : > { %v981_v2 = vsel %vm642_vm2, %v1881_v0, 0.0 }
 0x2bf   : > { %1043 = vadd.xlane.f32.xlu2 %v1042_v63 }
 0x2c2   : > { %1104 = vadd.xlane.f32.xlu0 %v1103_v1 }
 0x2c5   : > { %982 = vadd.xlane.f32.xlu1 %v981_v2  ;;  %v1717_v2 = vld [vmem:[%s2476_s24 + $0x8] sm:$0xff] }
 0x2c6   : > { %1164 = vmatpush.bf16.msra.mxu0 %v1717_v2 }
 0x2d6   : > { %1109 = vrot.lane.b32.xlu0 %v2506_v24, %s2178_s29 }
 0x2de   : > { %1048 = vrot.lane.b32.xlu1 %v2506_v24, %s2177_s7 }
 0x2e7   : > { %v670_v3 = vpop.xlane.xlu0 %669 }
 0x2e8   : > { %1882 = vrcp.f32 %v670_v3  ;;  %v1716_v3 = vld [vmem:[%s2476_s24] sm:$0xff] }
 0x2e9   : > { %1165 = vmatpush.bf16.msra.mxu0 %v1716_v3 }
 0x2ee   : > { %v1883_v6 = vpop.eup %1882 }
 0x2ef   : > { %v672_v7 = vmul.f32 %v1883_v6, %v2553_v26 }
 0x2f1   : > { %v793_v8 = vpop.xlane.xlu2 %792  ;;  %v673_v9 = vpack.c.bf16 %v672_v7, %v672_v7 }
 0x2f2   : > { %1884 = vrcp.f32 %v793_v8 }
 0x2f3   : > { %1653 = vmatmul.msk.bf16.vlgmr.msra.gmra.mxu2 %vm642_vm2, %v673_v9 }
 0x2f5   : > { %v731_v10 = vpop.xlane.xlu1 %730 }
 0x2f6   : > { %1886 = vrcp.f32 %v731_v10 }
 0x2f8   : > { %v1885_v11 = vpop.eup %1884 }
 0x2f9   : > { %v795_v12 = vmul.f32 %v1885_v11, %v1869_v37  ;;  %v988_v18 = vpop.permute.xlu2 %987 }
 0x2fa   : > { %v860_v13 = vpop.permute.xlu0 %859  ;;  %v993_v20 = vsel %vm679_vm3, %v988_v18, 0 }
 0x2fb   : > { %v865_v15 = vsel %vm679_vm3, %v860_v13, 0  ;;  %v796_v16 = vpack.c.bf16 %v795_v12, %v795_v12  ;;  %v2614_v12 = vld [vmem:[%s2454_s20] sm:$0xff] }
 0x2fc   : > { %v1887_v17 = vpop.eup %1886  ;;  %874 = vmatpush.bf16.msra.mxu2 %v865_v15  ;;  %v1142_v13 = vperm.slane %v2614_v12, 0 }
 0x2fd   : > { %v733_v24 = vmul.f32 %v1887_v17, %v2560_v39  ;;  %1657 = vmatmul.msk.bf16.vlgmr.msrb.gmra.mxu1 %vm642_vm2, %v796_v16 }
 0x2ff   : > { %v734_v19 = vpack.c.bf16 %v733_v24, %v733_v24 }
 0x303   : > { %1655 = vmatmul.msk.bf16.vlgmr.msrb.gmra.mxu2 %vm642_vm2, %v734_v19 }
 0x304   : > { %1002 = vmatpush.bf16.msrb.mxu2 %v993_v20 }
 0x30d   : > { %v928_v21 = vpop.permute.xlu1 %927 }
 0x30e   : > { %v933_v22 = vsel %vm679_vm3, %v928_v21, 0 }
 0x30f   : > { %942 = vmatpush.bf16.msra.mxu1 %v933_v22  ;;  %v2182_v22 = vmov 32.0  }
 0x325   : > { %v923_v23 = vpop.xlane.xlu0 %922 }
 0x326   : > { %1888 = vrcp.f32 %v923_v23 }
 0x32c   : > { %v1889_v25 = vpop.eup %1888 }
 0x32d   : > { %v925_v26 = vmul.f32 %v1889_v25, %v1873_v51  ;;  %v855_v27 = vpop.xlane.xlu0 %854 }
 0x32e   : > { %1890 = vrcp.f32 %v855_v27 }
 0x32f   : > { %v926_v28 = vpack.c.bf16 %v925_v26, %v925_v26 }
 0x331   : > { %1662 = vmatmul.msk.bf16.vlgmr.msra.gmra.mxu1 %vm642_vm2, %v926_v28 }
 0x332   : > { %v1044_v35 = vpop.xlane.xlu2 %1043 }
 0x334   : > { %v1891_v29 = vpop.eup %1890 }
 0x335   : > { %v857_v30 = vmul.f32 %v1891_v29, %v1875_v58  ;;  %v1105_v34 = vpop.xlane.xlu0 %1104 }
 0x337   : > { %v858_v31 = vpack.c.bf16 %v857_v30, %v857_v30 }
 0x338   : > { %v983_v32 = vpop.xlane.xlu1 %982 }
 0x339   : > { %1659 = vmatmul.msk.bf16.vlgmr.msra.gmra.mxu2 %vm642_vm2, %v858_v31  ;;  %1892 = vrcp.f32 %v983_v32 }
 0x33a   : > { %1894 = vrcp.f32 %v1044_v35 }
 0x33b   : > { %1896 = vrcp.f32 %v1105_v34 }
 0x33c   : > { %1898 = vrcp.f32 %v2182_v22 }
 0x33f   : > { %v1893_v33 = vpop.eup %1892 }
 0x340   : > { %v985_v36 = vmul.f32 %v1893_v33, %v1881_v0  ;;  %v1895_v40 = vpop.eup %1894 }
 0x341   : > { %v1046_v41 = vmul.f32 %v1895_v40, %v2576_v61  ;;  %v1897_v42 = vpop.eup %1896 }
 0x342   : > { %v986_v37 = vpack.c.bf16 %v985_v36, %v985_v36  ;;  %v1107_v46 = vmul.f32 %v1897_v42, %v2578_v62  ;;  %v1899_v23 = vpop.eup %1898  ;;  %v1718_v42 = vld [vmem:[%s2451_s11] sm:$0xff] }
 0x343   : > { %v1047_v45 = vpack.c.bf16 %v1046_v41, %v1046_v41  ;;  %v1181_v25 = vmul.f32 32.0, %v1899_v23  ;;  %vm1185_vm7 = vweird.f32 %v1899_v23 }
 0x344   : > { %v1108_v47 = vpack.c.bf16 %v1107_v46, %v1107_v46 }
 0x345   : > { %v1182_v26 = vsub.f32 1.0, %v1181_v25 }
 0x347   : > { %v1183_v27 = vmul.f32 %v1899_v23, %v1182_v26 }
 0x348   : > { %v1110_v38 = vpop.permute.xlu0 %1109 }
 0x349   : > { %v1115_v39 = vsel %vm679_vm3, %v1110_v38, 0  ;;  %1664 = vmatmul.msk.bf16.vlgmr.msrb.gmra.mxu2 %vm642_vm2, %v986_v37  ;;  %v1184_v28 = vadd.f32 %v1899_v23, %v1183_v27  ;;  %v1719_v38 = vld [vmem:[%s2451_s11 + $0x8] sm:$0xff] }
 0x34a   : > { %1124 = vmatpush.bf16.msra.mxu2 %v1115_v39 }
 0x350   : > { %v1049_v43 = vpop.permute.xlu1 %1048 }
 0x351   : > { %v1054_v44 = vsel %vm679_vm3, %v1049_v43, 0 }
 0x352   : > { %1063 = vmatpush.bf16.msrb.mxu1 %v1054_v44 }
 0x355   : > { %1666 = vmatmul.msk.bf16.vlgmr.msrb.gmra.mxu1 %vm642_vm2, %v1047_v45 }
 0x356   : > { %1261 = vmatpush.bf16.msra.mxu1 %v1719_v38 }
 0x359   : > { %1668 = vmatmul.msk.bf16.vlgmr.msra.gmra.mxu2 %vm642_vm2, %v1108_v47 }
 0x35a   : > { %1262 = vmatpush.bf16.msra.mxu1 %v1718_v42 }
 0x376   : > { %v692_v48 = vpop.f32.mrf.mxu2 }
 0x377   : > { %696 = vst.msk [vmem:[#allocation3] sm:$0xff] %vm642_vm2, %v692_v48 }
 0x37a   : > { %v814_v14 = vpop.f32.mrf.mxu1 }
 0x37b   : > { %819 = vrot.lane.b32.xlu0 %v814_v14, %s2179_s22 }
 0x37e   : > { %v694_v49 = vpop.f32.mrf.mxu2 }
 0x382   : > { %v816_v50 = vpop.f32.mrf.mxu1 }
 0x386   : > { %v752_v51 = vpop.f32.mrf.mxu2 }
 0x387   : > { %757 = vrot.lane.b32.xlu0 %v752_v51, %s2180_s30 }
 0x38e   : > { %v754_v52 = vpop.f32.mrf.mxu2 }
 0x3ae   : > { %v944_v53 = vpop.f32.mrf.mxu1 }
 0x3af   : > { %948 = vst.msk [vmem:[#allocation3 + $0x8] sm:$0xff] %vm642_vm2, %v944_v53 }
 0x3b6   : > { %v946_v54 = vpop.f32.mrf.mxu1 }
 0x3bc   : > { %v876_v55 = vpop.f32.mrf.mxu2 }
 0x3bd   : > { %881 = vrot.lane.b32.xlu2 %v876_v55, %s2181_s1 }
 0x3c4   : > { %v878_v56 = vpop.f32.mrf.mxu2 }
 0x3cc   : > { %v1004_v57 = vpop.f32.mrf.mxu2 }
 0x3cd   : > { %1009 = vrot.lane.b32.xlu1 %v1004_v57, %s2180_s30  ;;  %v1225_v57 = vperm.slane %v2614_v12, 1 }
 0x3d2   : > { %v1065_v58 = vpop.f32.mrf.mxu1 }
 0x3d4   : > { %v1006_v59 = vpop.f32.mrf.mxu2 }
 0x3d5   : > { %1070 = vrot.lane.b32.xlu1 %v1065_v58, %s2179_s22 }
 0x3da   : > { %v1067_v60 = vpop.f32.mrf.mxu1 }
 0x3dc   : > { %v1126_v61 = vpop.f32.mrf.mxu2 }
 0x3dd   : > { %1131 = vrot.lane.b32.xlu0 %v1126_v61, %s2181_s1  ;;  %v1228_v61 = vperm.slane %v2614_v12, 2 }
 0x3e4   : > { %v1128_v62 = vpop.f32.mrf.mxu2 }
 0x3ed   : > { %v820_v63 = vpop.permute.xlu0 %819 }
 0x3f9   : > { %v758_v0 = vpop.permute.xlu0 %757 }
 0x3fa   : > { %761 = vst.msk [vmem:[#allocation3] sm:$0xff] %vm760_vm4, %v758_v0 }
 0x3fb   : > { %823 = vst.msk [vmem:[#allocation3] sm:$0xff] %vm822_vm5, %v820_v63 }
 0x417   : > { %v882_v1 = vpop.permute.xlu2 %881 }
 0x418   : > { %885 = vst.msk [vmem:[#allocation3] sm:$0xff] %vm884_vm6, %v882_v1 }
 0x41f   : > { %v1135_v9 = vld [vmem:[#allocation3] sm:$0xff] }
 0x43f   : > { %v1010_v6 = vpop.permute.xlu1 %1009 }
 0x440   : > { %1012 = vst.msk [vmem:[#allocation3 + $0x8] sm:$0xff] %vm760_vm4, %v1010_v6  ;;  %v1723_v6 = vld [vmem:[%s2486_s3 + $0x18] sm:$0xff] }
 0x441   : > { %1329 = vmatpush.bf16.msra.mxu3 %v1723_v6 }
 0x447   : > { %v1071_v7 = vpop.permute.xlu1 %1070 }
 0x448   : > { %1073 = vst.msk [vmem:[#allocation3 + $0x8] sm:$0xff] %vm822_vm5, %v1071_v7  ;;  %v1722_v7 = vld [vmem:[%s2486_s3 + $0x10] sm:$0xff] }
 0x449   : > { %1330 = vmatpush.bf16.msra.mxu3 %v1722_v7 }
 0x44f   : > { %v1132_v8 = vpop.permute.xlu0 %1131 }
 0x450   : > { %1134 = vst.msk [vmem:[#allocation3 + $0x8] sm:$0xff] %vm884_vm6, %v1132_v8  ;;  %v1721_v8 = vld [vmem:[%s2486_s3 + $0x8] sm:$0xff] }
 0x451   : > { %1331 = vmatpush.bf16.msra.mxu3 %v1721_v8  ;;  %v1388_v8 = vperm.slane %v2614_v12, 5 }
 0x457   : > { %v1136_v10 = vld [vmem:[#allocation3 + $0x8] sm:$0xff] }
 0x458   : > { %v1137_v11 = vpack.c.bf16 %v1136_v10, %v1135_v9  ;;  %v1865_v9 = vld [vmem:[%s568_s17] ss:$0 sm:$0xff]  ;;  %s2794_s17 = sld [smem:[#allocation22_spill]] }
 0x45a   : > { %1677 = vmatmul.msk.bf16.vlgmr.msra.gmra.mxu0 %vm609_vm1, %v1137_v11  ;;  %v1720_v11 = vld [vmem:[%s2486_s3] sm:$0xff] }
 0x45b   : > { %1332 = vmatpush.bf16.msra.mxu3 %v1720_v11 }
 0x45e   : > { %p1704_p7 = scmp.ne.s32.totalorder %s2794_s17, 1 }
 0x4d7   : > { %v1167_v15 = vpop.f32.mrf.mxu0 }
 0x4d8   : > { %v1168_v16 = vadd.f32 %v1167_v15, %v1142_v13 }
 0x4da   : > { %v1172_v17 = vadd.f32 %v1168_v16, %v2491_v4  ;;  %v2621_v4 = vsel %vm1185_vm7, %v1899_v23, %v1184_v28 }
 0x4dc   : > { %v1174_v24 = vsel %vm609_vm1, %v1172_v17, 0.0 }
 0x4dd   : > { %1175 = vadd.xlane.f32.xlu1 %v1174_v24 }
 0x4df   : > { %v1169_v18 = vpop.f32.mrf.mxu0 }
 0x4e0   : > { %v1170_v19 = vadd.f32 %v1169_v18, %v1142_v13 }
 0x4e2   : > { %v1173_v20 = vadd.f32 %v1170_v19, %v2493_v5 }
 0x4e4   : > { %v1177_v21 = vsel %vm609_vm1, %v1173_v20, 0.0 }
 0x4e5   : > { %1178 = vadd.xlane.f32.xlu0 %v1177_v21 }
 0x550   : > { %v1176_v29 = vpop.xlane.xlu1 %1175 }
 0x551   : > { %v1187_v30 = vmul.f32 %v2621_v4, %v1176_v29 }
 0x553   : > { %v1189_v31 = vsub.f32 %v1172_v17, %v1187_v30 }
 0x555   : > { %v1191_v5 = vmul.f32 %v1189_v31, %v1189_v31 }
 0x557   : > { %v1193_v32 = vsel %vm609_vm1, %v1191_v5, 0.0 }
 0x558   : > { %v1179_v33 = vpop.xlane.xlu0 %1178  ;;  %1194 = vadd.xlane.f32.xlu2 %v1193_v32 }
 0x559   : > { %v1188_v34 = vmul.f32 %v2621_v4, %v1179_v33 }
 0x55b   : > { %v1190_v35 = vsub.f32 %v1173_v20, %v1188_v34 }
 0x55d   : > { %v1192_v36 = vmul.f32 %v1190_v35, %v1190_v35 }
 0x55f   : > { %v1196_v37 = vsel %vm609_vm1, %v1192_v36, 0.0 }
 0x560   : > { %1197 = vadd.xlane.f32.xlu1 %v1196_v37 }
 0x5cb   : > { %v1195_v39 = vpop.xlane.xlu2 %1194 }
 0x5cc   : > { %v1199_v40 = vmul.f32 %v1195_v39, %v2621_v4 }
 0x5ce   : > { %v1201_v41 = vadd.f32 1e-12, %v1199_v40 }
 0x5d0   : > { %1900 = vrsqrt.f32 %v1201_v41  ;;  %vm1209_vm9 = vweird.f32 %v1201_v41 }
 0x5d3   : > { %v1198_v43 = vpop.xlane.xlu1 %1197 }
 0x5d4   : > { %v1200_v44 = vmul.f32 %v1198_v43, %v2621_v4 }
 0x5d6   : > { %v1901_v45 = vpop.eup %1900  ;;  %v1202_v46 = vadd.f32 1e-12, %v1200_v44 }
 0x5d7   : > { %v1204_v47 = vmul.f32 %v1901_v45, %v1201_v41  ;;  %vm1210_vm8 = vweird.f32 %v1901_v45 }
 0x5d8   : > { %1902 = vrsqrt.f32 %v1202_v46  ;;  %vm1211_vm10 = vmor %vm1209_vm9, %vm1210_vm8  ;;  %vm1219_vm12 = vweird.f32 %v1202_v46 }
 0x5d9   : > { %v1205_v48 = vmul.f32 %v1901_v45, %v1204_v47 }
 0x5db   : > { %v1206_v14 = vmul.f32 0.5, %v1205_v48 }
 0x5dd   : > { %v1207_v49 = vsub.f32 1.5, %v1206_v14 }
 0x5de   : > { %v1903_v50 = vpop.eup %1902 }
 0x5df   : > { %v1208_v51 = vmul.f32 %v1901_v45, %v1207_v49  ;;  %v1214_v52 = vmul.f32 %v1903_v50, %v1202_v46  ;;  %vm1220_vm11 = vweird.f32 %v1903_v50 }
 0x5e0   : > { %vm1221_vm13 = vmor %vm1219_vm12, %vm1220_vm11 }
 0x5e1   : > { %v1215_v53 = vmul.f32 %v1903_v50, %v1214_v52  ;;  %v1212_v54 = vsel %vm1211_vm10, %v1901_v45, %v1208_v51 }
 0x5e2   : > { %v1223_v58 = vmul.f32 %v1212_v54, %v1189_v31 }
 0x5e3   : > { %v1216_v55 = vmul.f32 0.5, %v1215_v53 }
 0x5e4   : > { %v1226_v62 = vmul.f32 %v1225_v57, %v1223_v58 }
 0x5e5   : > { %v1217_v56 = vsub.f32 1.5, %v1216_v55 }
 0x5e6   : > { %v1229_v1 = vadd.f32 %v1228_v61, %v1226_v62 }
 0x5e7   : > { %v1218_v59 = vmul.f32 %v1903_v50, %v1217_v56 }
 0x5e9   : > { %v1222_v60 = vsel %vm1221_vm13, %v1903_v50, %v1218_v59 }
 0x5ea   : > { %v1224_v63 = vmul.f32 %v1222_v60, %v1190_v35  ;;  %v1296_v35 = vperm.slane %v2614_v12, 3 }
 0x5ec   : > { %v1227_v0 = vmul.f32 %v1225_v57, %v1224_v63 }
 0x5ee   : > { %v1230_v2 = vadd.f32 %v1228_v61, %v1227_v0 }
 0x5f0   : > { %v1231_v3 = vpack.c.bf16 %v1230_v2, %v1229_v1 }
 0x5f2   : > { %1686 = vmatmul.msk.bf16.vlgmr.msra.gmra.mxu1 %vm609_vm1, %v1231_v3  ;;  %v1385_v3 = vperm.slane %v2614_v12, 4 }
 0x66f   : > { %v1264_v10 = vpop.f32.mrf.mxu1 }
 0x670   : > { %v1265_v13 = vadd.f32 %v1865_v9, %v1264_v10 }
 0x672   : > { %v1269_v15 = vmul.f32 %v1265_v13, %v1265_v13 }
 0x674   : > { %v1271_v16 = vmul.f32 %v1269_v15, %v1265_v13 }
 0x676   : > { %v1273_v17 = vmul.f32 0.044715, %v1271_v16 }
 0x677   : > { %v1266_v24 = vpop.f32.mrf.mxu1 }
 0x678   : > { %v1275_v18 = vadd.f32 %v1273_v17, %v1265_v13  ;;  %v1267_v19 = vadd.f32 %v1865_v9, %v1266_v24 }
 0x67a   : > { %v1277_v20 = vmul.f32 0.7978846, %v1275_v18  ;;  %v1270_v21 = vmul.f32 %v1267_v19, %v1267_v19 }
 0x67c   : > { %v1272_v22 = vmul.f32 %v1270_v21, %v1267_v19  ;;  %1904 = vtanh.f32 %v1277_v20 }
 0x67e   : > { %v1274_v23 = vmul.f32 0.044715, %v1272_v22 }
 0x680   : > { %v1276_v25 = vadd.f32 %v1274_v23, %v1267_v19 }
 0x682   : > { %v1278_v26 = vmul.f32 0.7978846, %v1276_v25  ;;  %v1905_v27 = vpop.eup %1904 }
 0x683   : > { %v1281_v28 = vadd.f32 1.0, %v1905_v27 }
 0x684   : > { %1906 = vtanh.f32 %v1278_v26 }
 0x685   : > { %v1283_v30 = vmul.f32 0.5, %v1281_v28 }
 0x687   : > { %v1285_v32 = vmul.f32 %v1283_v30, %v1265_v13 }
 0x68a   : > { %v1907_v29 = vpop.eup %1906 }
 0x68b   : > { %v1282_v31 = vadd.f32 1.0, %v1907_v29 }
 0x68d   : > { %v1284_v5 = vmul.f32 0.5, %v1282_v31 }
 0x68f   : > { %v1286_v33 = vmul.f32 %v1284_v5, %v1267_v19 }
 0x691   : > { %v1287_v34 = vpack.c.bf16 %v1286_v33, %v1285_v32 }
 0x693   : > { %1703 = vmatmul.msk.bf16.vlgmr.msra.gmra.mxu3 %vm1321_vm14, %v1287_v34 }
 0x716   : > { %v1334_v36 = vpop.f32.mrf.mxu3 }
 0x717   : > { %v1335_v37 = vadd.f32 %v1334_v36, %v1296_v35 }
 0x719   : > { %v1339_v38 = vadd.f32 %v1335_v37, %v1229_v1 }
 0x71b   : > { %v1341_v39 = vsel %vm609_vm1, %v1339_v38, 0.0 }
 0x71c   : > { %1342 = vadd.xlane.f32.xlu0 %v1341_v39 }
 0x71e   : > { %v1336_v40 = vpop.f32.mrf.mxu3 }
 0x71f   : > { %v1337_v41 = vadd.f32 %v1336_v40, %v1296_v35 }
 0x721   : > { %v1340_v42 = vadd.f32 %v1337_v41, %v1230_v2 }
 0x723   : > { %v1344_v43 = vsel %vm609_vm1, %v1340_v42, 0.0 }
 0x724   : > { %1345 = vadd.xlane.f32.xlu1 %v1344_v43 }
 0x78f   : > { %v1343_v44 = vpop.xlane.xlu0 %1342 }
 0x790   : > { %v1347_v45 = vmul.f32 %v1343_v44, %v2621_v4 }
 0x792   : > { %v1349_v46 = vsub.f32 %v1339_v38, %v1347_v45 }
 0x794   : > { %v1351_v47 = vmul.f32 %v1349_v46, %v1349_v46 }
 0x796   : > { %v1353_v48 = vsel %vm609_vm1, %v1351_v47, 0.0 }
 0x797   : > { %v1346_v14 = vpop.xlane.xlu1 %1345  ;;  %1354 = vadd.xlane.f32.xlu0 %v1353_v48 }
 0x798   : > { %v1348_v49 = vmul.f32 %v1346_v14, %v2621_v4 }
 0x79a   : > { %v1350_v50 = vsub.f32 %v1340_v42, %v1348_v49 }
 0x79c   : > { %v1352_v51 = vmul.f32 %v1350_v50, %v1350_v50 }
 0x79e   : > { %v1356_v52 = vsel %vm609_vm1, %v1352_v51, 0.0 }
 0x79f   : > { %1357 = vadd.xlane.f32.xlu1 %v1356_v52 }
 0x80a   : > { %v1355_v53 = vpop.xlane.xlu0 %1354 }
 0x80b   : > { %v1359_v54 = vmul.f32 %v1355_v53, %v2621_v4 }
 0x80d   : > { %v1361_v55 = vadd.f32 1e-12, %v1359_v54 }
 0x80f   : > { %1908 = vrsqrt.f32 %v1361_v55  ;;  %vm1369_vm0 = vweird.f32 %v1361_v55 }
 0x812   : > { %v1358_v56 = vpop.xlane.xlu1 %1357 }
 0x813   : > { %v1360_v57 = vmul.f32 %v1358_v56, %v2621_v4 }
 0x815   : > { %v1909_v58 = vpop.eup %1908  ;;  %v1362_v59 = vadd.f32 1e-12, %v1360_v57 }
 0x816   : > { %v1364_v60 = vmul.f32 %v1909_v58, %v1361_v55  ;;  %vm1370_vm15 = vweird.f32 %v1909_v58 }
 0x817   : > { %1910 = vrsqrt.f32 %v1362_v59  ;;  %vm1371_vm2 = vmor %vm1369_vm0, %vm1370_vm15  ;;  %vm1379_vm4 = vweird.f32 %v1362_v59 }
 0x818   : > { %v1365_v61 = vmul.f32 %v1909_v58, %v1364_v60 }
 0x81a   : > { %v1366_v62 = vmul.f32 0.5, %v1365_v61 }
 0x81c   : > { %v1367_v63 = vsub.f32 1.5, %v1366_v62 }
 0x81d   : > { %v1911_v0 = vpop.eup %1910 }
 0x81e   : > { %v1368_v1 = vmul.f32 %v1909_v58, %v1367_v63  ;;  %v1374_v2 = vmul.f32 %v1911_v0, %v1362_v59  ;;  %vm1380_vm3 = vweird.f32 %v1911_v0 }
 0x81f   : > { %vm1381_vm5 = vmor %vm1379_vm4, %vm1380_vm3 }
 0x820   : > { %v1372_v6 = vsel %vm1371_vm2, %v1909_v58, %v1368_v1  ;;  %v1375_v7 = vmul.f32 %v1911_v0, %v1374_v2 }
 0x821   : > { %v1383_v4 = vmul.f32 %v1372_v6, %v1349_v46 }
 0x822   : > { %v1376_v9 = vmul.f32 0.5, %v1375_v7 }
 0x823   : > { %v1386_v10 = vmul.f32 %v1385_v3, %v1383_v4 }
 0x824   : > { %v1377_v11 = vsub.f32 1.5, %v1376_v9 }
 0x825   : > { %v1389_v13 = vadd.f32 %v1388_v8, %v1386_v10 }
 0x826   : > { %v1378_v15 = vmul.f32 %v1911_v0, %v1377_v11 }
 0x827   : > { %1391 = vst.msk [vmem:[#allocation2] sm:$0xff] %vm609_vm1, %v1389_v13 }
 0x828   : > { %v1382_v16 = vsel %vm1381_vm5, %v1911_v0, %v1378_v15 }
 0x829   : > { %v1384_v17 = vmul.f32 %v1382_v16, %v1350_v50 }
 0x82b   : > { %v1387_v24 = vmul.f32 %v1385_v3, %v1384_v17  ;;  %1396 = sbr.rel (%p1704_p7) target bundleno = 2098 (0x832), region = 80 }
 0x82d   : > { %v1390_v18 = vadd.f32 %v1388_v8, %v1387_v24 }
 0x82f   : > { %1392 = vst.msk [vmem:[#allocation2 + $0x8] sm:$0xff] %vm609_vm1, %v1390_v18 }
 0x830   : > { %1397 = vst.msk [vmem:[%s2488_s25] sm:$0xff] %vm609_vm1, %v1389_v13 }
 0x831   : > { %1398 = vst.msk [vmem:[%s2488_s25 + $0x8] sm:$0xff] %vm609_vm1, %v1390_v18 }
 0x832 PF: > { %s1724_s18 = sshll.u32 %s2150_s16, 4  ;;  %s2796_s28 = sld [smem:[#allocation41_spill]] }
 0x833   : > { %s1412_s24 = sshll.u32 %s2488_s25, 4  ;;  %s1400_s3 = scalar_lea.sflag [#allocation6], %s2430_s0  ;;  %s1413_s24 = int_to_ptr.vmem [resolvable:$true] %s1412_s24 }
 0x838   : > { %s1411_s19 = scalar_lea.hbm %s2796_s28, %s1724_s18  ;;  %s2052_s16 = scalar_lea.hbm %s2796_s28, 32 }
 0x839   : > { %s1414_s27 = sshll.u32 %s1411_s19, 4  ;;  %s1415_s27 = int_to_ptr.hbm [resolvable:$true] %s1414_s27 }
 0x83a   : > { %s2046_s5 = sshra.s32 %s1415_s27, 4  ;;  %s2047_s5 = int_to_ptr.hbm [resolvable:$true] %s2046_s5 }
 0x83b   : > { %s2048_s8 = scalar_lea.hbm %s2047_s5, 16  ;;  %p2053_p8 = scmp.lt.s32.totalorder %s2047_s5, %s2796_s28 }
 0x83c   : > { %p2049_p5 = scmp.ne.s32.totalorder %s2047_s5, %s2048_s8  ;;  %p2054_p9 = scmp.lt.s32.totalorder %s2052_s16, %s2048_s8 }
 0x83e   : > { %p2050_p1 = pnand %p2049_p5, %p2346_p6  ;;  %p2055_p3 = por %p2054_p9, %p2053_p8 }
 0x840   : > { %p2051_p4 = pneg %p2050_p1 }
 0x842   : > { %p2056_p10 = pnand %p2055_p3, %p2051_p4 }
 0x844   : > { %2059 = shalt.err (!%p2056_p10)
}
 0x845   : > { %s2183_s0 = smov 128  }
 0x846   : > { %1733 = dma.vmem_to_hbm [thread:$0]  (%p2346_p6), %s1413_s24, 256, %s1415_s27, %s1400_s3, %s2183_s0, %s2183_s0, %s2180_s30  }
 0x847 PF: > { %s2797_s25 = sld [smem:[#allocation25_spill]] }
 0x848   : > { %s2798_s26 = sld [smem:[#allocation19_spill]] }
 0x84d   : > { %p1753_p0 = scmp.ge.s32.totalorder %s2797_s25, 2 }
 0x84e   : > { %s1429_s23 = sand.u32 1, %s2798_s26  }
 0x84f   : > { %p1749_p12 = pnand %p1753_p0, %p2353_p2  ;;  %s1430_s12 = scalar_lea.sflag [#allocation6], %s1429_s23 }
 0x851   : > { %p1750_p13 = pneg %p1749_p12 }
 0x853   : > { %2117 = dma.done.wait (%p1750_p13), %s1430_s12, 256  }
 0x854   : > { %2119 = vsyncadd (%p1750_p13), %s1430_s12, 4294967040  ;;  %s31_s19 = sadd.s32 1, %s2797_s25   ;;  %s2800_s30 = sld [smem:[#allocation17_spill]] }
 0x855   : > { %p28_p11 = scmp.ge.s32.totalorder %s31_s19, 6   ;;  %s2801_s10 = sld [smem:[#allocation18_spill]] }
 0x856   : > { %s2802_s11 = sld [smem:[#allocation27_spill]] }
 0x857   : > { %s2803_s12 = sld [smem:[#allocation20_spill]] }
 0x858   : > { %s2804_s13 = sld [smem:[#allocation21_spill]] }
 0x859   : > { %s2805_s14 = sld [smem:[#allocation31_spill]]  ;;  %30 = sbr.rel (!%p28_p11) target bundleno = 24 (0x18), region = 162 }
 0x85a   : > { %s2806_s15 = sld [smem:[#allocation23_spill]] }
 0x85b   : > { %s2807_s16 = sld [smem:[#allocation24_spill]] }
 0x85c   : > { %s2808_s17 = sld [smem:[#allocation26_spill]] }
 0x85d   : > { %s2809_s18 = sld [smem:[#allocation30_spill]] }
 0x85e   :  { %1436 = vsyncpa [#allocation5], 1 }
 0x85f   :  { %1438 = vsyncpa [#allocation5 + $0x1], 1 }
 0x860   :  { %1439 = vsyncpa [#allocation8], 1 }
 0x861   :  { %1441 = vsyncpa [#allocation8 + $0x1], 1 }
 0x862   :  { %1442 = vsyncpa [#allocation11], 1 }
 0x863   :  { %1444 = vsyncpa [#allocation11 + $0x1], 1 }
 0x864   :  { %1445 = vsyncpa [#allocation6], 1 }
 0x865   :  { %1447 = vsyncpa [#allocation6 + $0x1], 1 }

</bundles_post_ra>
